<compile_context>
chip_gen: v6e
topology: v6e:2x2x1
jax: 0.10.0
libtpu: 0.0.40
codegen_flags: <defaults>
</compile_context>

<pallas_src>
import jax
import jax.numpy as jnp
from jax.experimental import pallas as pl
from jax.experimental.pallas import tpu as pltpu


def _deepant_kernel(x_ref, w1_ref, b1_ref, w2_ref, b2_ref,
                    wd1_ref, bd1_ref, wd2_ref, bd2_ref, out_ref):
    # x_ref block: (L, TB, T) -- length-major, batch on sublanes, channels on lanes.
    x = x_ref[...]
    L, TB, T = x.shape
    cdtype = w1_ref.dtype            # compute dtype for MXU operands (f32 or bf16)

    # ---- conv1 (kernel_size=3) + ReLU: each tap is one (L1*TB, T) x (T, 16) matmul
    L1 = L - 2
    h = None
    for k in range(3):
        xk = x[k:k + L1].reshape(L1 * TB, T)
        hk = jnp.dot(xk, w1_ref[k], preferred_element_type=jnp.float32)
        h = hk if h is None else h + hk
    h = jnp.maximum(h + b1_ref[...], 0.0)               # (L1*TB, 16) f32

    # ---- maxpool1 (k=2): aligned sublane-slice max, no relayout
    C1 = h.shape[1]
    P1 = L1 // 2
    h = h[:2 * P1 * TB].reshape(P1, 2 * TB, C1)
    h = jnp.maximum(h[:, :TB], h[:, TB:])               # (P1, TB, 16)

    # ---- conv2 (kernel_size=3) + ReLU
    L2 = P1 - 2
    g = None
    for k in range(3):
        hk = h[k:k + L2].reshape(L2 * TB, C1).astype(cdtype)
        gk = jnp.dot(hk, w2_ref[k], preferred_element_type=jnp.float32)
        g = gk if g is None else g + gk
    g = jnp.maximum(g + b2_ref[...], 0.0)               # (L2*TB, 16) f32

    # ---- maxpool2 (k=2)
    C2 = g.shape[1]
    P2 = L2 // 2
    g = g[:2 * P2 * TB].reshape(P2, 2 * TB, C2)
    g = jnp.maximum(g[:, :TB], g[:, TB:])               # (P2, TB, 16)

    # ---- dense1 + ReLU: contraction over (position, channel) expressed as P2
    # accumulated (TB, 16) x (16, H) matmuls -- no flatten repack in-kernel.
    d1 = None
    for p in range(P2):
        dp = jnp.dot(g[p].astype(cdtype), wd1_ref[p],
                     preferred_element_type=jnp.float32)
        d1 = dp if d1 is None else d1 + dp
    d1 = jnp.maximum(d1 + bd1_ref[...], 0.0)            # (TB, 2*nf) f32

    # dropout(p=0.25): eval-mode identity
    # TODO(synk): training-mode dropout mask (stateful PRNG) not implemented.

    # ---- dense2 (output lanes zero-padded to a multiple of 128 in the wrapper)
    out = jnp.dot(d1.astype(cdtype), wd2_ref[...],
                  preferred_element_type=jnp.float32) + bd2_ref[...]
    out_ref[...] = out.astype(out_ref.dtype)            # (TB, nf_pad), dense store


def deepant3d_forward(x, params, *, block_b=512, compute_dtype=jnp.float32):
    """x: (B, time_steps, n_features) float32 -- same NCL layout as the PyTorch module."""
    w1, b1, w2, b2, wd1, bd1, wd2, bd2 = params
    B, T, L = x.shape
    C1 = w1.shape[0]                 # 16
    C2 = w2.shape[0]                 # 16
    nf = wd2.shape[0]
    n_hidden = wd1.shape[0]          # 2 * nf
    P2 = ((L - 2) // 2 - 2) // 2
    assert wd1.shape[1] == C2 * P2, (wd1.shape, C2, P2)

    def rup(a, m):
        return ((a + m - 1) // m) * m

    # Batch tile: multiple of 16 sublanes (covers f32 and bf16 tiling), capped
    # by the padded batch so tiny batches don't over-pad.
    tb = min(rup(block_b, 16), max(16, rup(B, 16)))
    b_pad = rup(B, tb)
    nf_pad = rup(nf, 128)            # lane-dense output block

    cd = compute_dtype
    # --- one-time layout / dtype prep in plain JAX (outside the kernel) ---
    x_lbt = jnp.transpose(x, (2, 0, 1)).astype(cd)               # (L, B, T)
    if b_pad != B:
        x_lbt = jnp.pad(x_lbt, ((0, 0), (0, b_pad - B), (0, 0)))

    w1_t = jnp.transpose(w1, (2, 1, 0)).astype(cd)               # (3, T, C1)
    w2_t = jnp.transpose(w2, (2, 1, 0)).astype(cd)               # (3, C1, C2)
    # PyTorch flatten order is (channel, position); regroup as (pos, chan, hidden).
    wd1_t = wd1.reshape(n_hidden, C2, P2).transpose(2, 1, 0).astype(cd)  # (P2, C2, H)
    wd2_t = jnp.pad(wd2.T, ((0, 0), (0, nf_pad - nf))).astype(cd)        # (H, nf_pad)
    # Biases stay f32 so all VPU math is f32 (v5e-safe even with bf16 operands).
    b1r = b1.reshape(1, C1).astype(jnp.float32)
    b2r = b2.reshape(1, C2).astype(jnp.float32)
    bd1r = bd1.reshape(1, n_hidden).astype(jnp.float32)
    bd2r = jnp.pad(bd2, (0, nf_pad - nf)).reshape(1, nf_pad).astype(jnp.float32)

    def full(a):
        return pl.BlockSpec(a.shape, lambda i: (0,) * a.ndim)

    out = pl.pallas_call(
        _deepant_kernel,
        out_shape=jax.ShapeDtypeStruct((b_pad, nf_pad), jnp.float32),
        grid=(b_pad // tb,),
        in_specs=[
            pl.BlockSpec((L, tb, T), lambda i: (0, i, 0)),
            full(w1_t), full(b1r),
            full(w2_t), full(b2r),
            full(wd1_t), full(bd1r),
            full(wd2_t), full(bd2r),
        ],
        out_specs=pl.BlockSpec((tb, nf_pad), lambda i: (i, 0)),
        compiler_params=pltpu.CompilerParams(
            dimension_semantics=("parallel",)),
    )(x_lbt, w1_t, b1r, w2_t, b2r, wd1_t, bd1r, wd2_t, bd2r)

    return out[:B, :nf]


def ref_forward(x, params):
    """Pure-JAX reference mirroring the PyTorch forward (eval mode)."""
    w1, b1, w2, b2, wd1, bd1, wd2, bd2 = params

    def conv1d(x, w, b):
        K = w.shape[2]
        Lout = x.shape[2] - K + 1
        out = jnp.zeros((x.shape[0], w.shape[0], Lout), jnp.float32)
        for k in range(K):
            out = out + jnp.einsum('bcl,oc->bol', x[:, :, k:k + Lout], w[:, :, k])
        return out + b[None, :, None]

    def maxpool(h):
        B, C, L = h.shape
        return h[:, :, :(L // 2) * 2].reshape(B, C, L // 2, 2).max(-1)

    h = maxpool(jax.nn.relu(conv1d(x, w1, b1)))
    h = maxpool(jax.nn.relu(conv1d(h, w2, b2)))
    flat = h.reshape(h.shape[0], -1)
    d1 = jax.nn.relu(flat @ wd1.T + bd1)
    return d1 @ wd2.T + bd2


if __name__ == "__main__":
    time_steps = 8          # in_channels of conv1d_1
    n_features = 30         # length; ((30-2)//2 - 2)//2 * 16 = 96 -> Linear(96, ...)

    key = jax.random.PRNGKey(0)
    ks = jax.random.split(key, 9)
    w1 = 0.1 * jax.random.normal(ks[0], (16, time_steps, 3), jnp.float32)
    b1 = 0.1 * jax.random.normal(ks[1], (16,), jnp.float32)
    w2 = 0.1 * jax.random.normal(ks[2], (16, 16, 3), jnp.float32)
    b2 = 0.1 * jax.random.normal(ks[3], (16,), jnp.float32)
    wd1 = 0.1 * jax.random.normal(ks[4], (n_features * 2, 96), jnp.float32)
    bd1 = 0.1 * jax.random.normal(ks[5], (n_features * 2,), jnp.float32)
    wd2 = 0.1 * jax.random.normal(ks[6], (n_features, n_features * 2), jnp.float32)
    bd2 = 0.1 * jax.random.normal(ks[7], (n_features,), jnp.float32)
    params = (w1, b1, w2, b2, wd1, bd1, wd2, bd2)

    # batch=2: tiny batch (single padded tile). batch=300 with block_b=128:
    # multi-step batch-tiled grid including a remainder (padded) block.
    for batch, blk in ((2, 512), (300, 128)):
        x = jax.random.normal(ks[8], (batch, time_steps, n_features), jnp.float32)
        ref = jax.block_until_ready(ref_forward(x, params))

        out = jax.block_until_ready(
            deepant3d_forward(x, params, block_b=blk))
        assert out.shape == (batch, n_features), out.shape
        assert jnp.allclose(out, ref, atol=1e-4, rtol=1e-4), (
            "f32 mismatch", batch, float(jnp.max(jnp.abs(out - ref))))

        # bf16 operands (halved input DMA, 2x MXU rate on v6e/v7x); accumulation
        # and VPU math remain f32, so only operand-rounding error vs. the f32 ref.
        out_bf16 = jax.block_until_ready(
            deepant3d_forward(x, params, block_b=blk, compute_dtype=jnp.bfloat16))
        assert jnp.allclose(out_bf16, ref, atol=5e-2, rtol=5e-2), (
            "bf16 mismatch", batch, float(jnp.max(jnp.abs(out_bf16 - ref))))

    print("KERNEL_OK")
</pallas_src>

<mosaic_0001>
module attributes {stable_mosaic.version = 11 : i64} {
  func.func @_deepant_kernel(%arg0: i32, %arg1: memref<30x16x8xf32, #tpu.memory_space<vmem>>, %arg2: memref<3x8x16xf32, #tpu.memory_space<vmem>>, %arg3: memref<1x16xf32, #tpu.memory_space<vmem>>, %arg4: memref<3x16x16xf32, #tpu.memory_space<vmem>>, %arg5: memref<1x16xf32, #tpu.memory_space<vmem>>, %arg6: memref<6x16x60xf32, #tpu.memory_space<vmem>>, %arg7: memref<1x60xf32, #tpu.memory_space<vmem>>, %arg8: memref<60x128xf32, #tpu.memory_space<vmem>>, %arg9: memref<1x128xf32, #tpu.memory_space<vmem>>, %arg10: memref<16x128xf32, #tpu.memory_space<vmem>>) attributes {dimension_semantics = [#tpu.dimension_semantics<parallel>], iteration_bounds = array<i64: 1>, scalar_prefetch = 0 : i64, scratch_operands = 0 : i64, tpu.core_type = #tpu.core_type<tc>, window_params = [{transform_indices = @transform_0, window_bounds = array<i64: 30, 16, 8>}, {pipeline_mode = #tpu.pipeline_mode<synchronous>, transform_indices = @transform_1, window_bounds = array<i64: 3, 8, 16>}, {pipeline_mode = #tpu.pipeline_mode<synchronous>, transform_indices = @transform_2, window_bounds = array<i64: 1, 16>}, {pipeline_mode = #tpu.pipeline_mode<synchronous>, transform_indices = @transform_3, window_bounds = array<i64: 3, 16, 16>}, {pipeline_mode = #tpu.pipeline_mode<synchronous>, transform_indices = @transform_4, window_bounds = array<i64: 1, 16>}, {pipeline_mode = #tpu.pipeline_mode<synchronous>, transform_indices = @transform_5, window_bounds = array<i64: 6, 16, 60>}, {pipeline_mode = #tpu.pipeline_mode<synchronous>, transform_indices = @transform_6, window_bounds = array<i64: 1, 60>}, {pipeline_mode = #tpu.pipeline_mode<synchronous>, transform_indices = @transform_7, window_bounds = array<i64: 60, 128>}, {pipeline_mode = #tpu.pipeline_mode<synchronous>, transform_indices = @transform_8, window_bounds = array<i64: 1, 128>}, {transform_indices = @transform_9, window_bounds = array<i64: 16, 128>}]} {
    %c0 = arith.constant 0 : index
    %c0_0 = arith.constant 0 : index
    %c0_1 = arith.constant 0 : index
    %0 = vector.load %arg1[%c0, %c0_0, %c0_1] : memref<30x16x8xf32, #tpu.memory_space<vmem>>, vector<30x16x8xf32>
    %1 = vector.extract_strided_slice %0 {offsets = [0, 0, 0], sizes = [28, 16, 8], strides = [1, 1, 1]} : vector<30x16x8xf32> to vector<28x16x8xf32>
    %2 = vector.shape_cast %1 : vector<28x16x8xf32> to vector<448x8xf32>
    %c0_2 = arith.constant 0 : index
    %c0_3 = arith.constant 0 : index
    %c0_4 = arith.constant 0 : index
    %3 = vector.load %arg2[%c0_2, %c0_3, %c0_4] : memref<3x8x16xf32, #tpu.memory_space<vmem>>, vector<1x8x16xf32>
    %4 = vector.shape_cast %3 : vector<1x8x16xf32> to vector<8x16xf32>
    %cst = arith.constant dense<0.000000e+00> : vector<448x16xf32>
    %5 = tpu.matmul %2, %4, %cst {dimension_numbers = #tpu.dot_dimension_numbers<[1], [0], [0], [1], [0, 0, 1, 1], [], []>} : vector<448x8xf32>, vector<8x16xf32>, vector<448x16xf32> -> vector<448x16xf32>
    %6 = vector.extract_strided_slice %0 {offsets = [1, 0, 0], sizes = [28, 16, 8], strides = [1, 1, 1]} : vector<30x16x8xf32> to vector<28x16x8xf32>
    %7 = vector.shape_cast %6 : vector<28x16x8xf32> to vector<448x8xf32>
    %c1 = arith.constant 1 : index
    %c0_5 = arith.constant 0 : index
    %c0_6 = arith.constant 0 : index
    %8 = vector.load %arg2[%c1, %c0_5, %c0_6] : memref<3x8x16xf32, #tpu.memory_space<vmem>>, vector<1x8x16xf32>
    %9 = vector.shape_cast %8 : vector<1x8x16xf32> to vector<8x16xf32>
    %cst_7 = arith.constant dense<0.000000e+00> : vector<448x16xf32>
    %10 = tpu.matmul %7, %9, %cst_7 {dimension_numbers = #tpu.dot_dimension_numbers<[1], [0], [0], [1], [0, 0, 1, 1], [], []>} : vector<448x8xf32>, vector<8x16xf32>, vector<448x16xf32> -> vector<448x16xf32>
    %11 = arith.addf %5, %10 : vector<448x16xf32>
    %12 = vector.extract_strided_slice %0 {offsets = [2, 0, 0], sizes = [28, 16, 8], strides = [1, 1, 1]} : vector<30x16x8xf32> to vector<28x16x8xf32>
    %13 = vector.shape_cast %12 : vector<28x16x8xf32> to vector<448x8xf32>
    %c2 = arith.constant 2 : index
    %c0_8 = arith.constant 0 : index
    %c0_9 = arith.constant 0 : index
    %14 = vector.load %arg2[%c2, %c0_8, %c0_9] : memref<3x8x16xf32, #tpu.memory_space<vmem>>, vector<1x8x16xf32>
    %15 = vector.shape_cast %14 : vector<1x8x16xf32> to vector<8x16xf32>
    %cst_10 = arith.constant dense<0.000000e+00> : vector<448x16xf32>
    %16 = tpu.matmul %13, %15, %cst_10 {dimension_numbers = #tpu.dot_dimension_numbers<[1], [0], [0], [1], [0, 0, 1, 1], [], []>} : vector<448x8xf32>, vector<8x16xf32>, vector<448x16xf32> -> vector<448x16xf32>
    %17 = arith.addf %11, %16 : vector<448x16xf32>
    %c0_11 = arith.constant 0 : index
    %c0_12 = arith.constant 0 : index
    %18 = vector.load %arg3[%c0_11, %c0_12] : memref<1x16xf32, #tpu.memory_space<vmem>>, vector<1x16xf32>
    %19 = vector.broadcast %18 : vector<1x16xf32> to vector<448x16xf32>
    %20 = arith.addf %17, %19 : vector<448x16xf32>
    %cst_13 = arith.constant 0.000000e+00 : f32
    %21 = vector.broadcast %cst_13 : f32 to vector<448x16xf32>
    %22 = arith.maximumf %20, %21 : vector<448x16xf32>
    %23 = vector.shape_cast %22 : vector<448x16xf32> to vector<14x32x16xf32>
    %24 = vector.extract_strided_slice %23 {offsets = [0, 0, 0], sizes = [14, 16, 16], strides = [1, 1, 1]} : vector<14x32x16xf32> to vector<14x16x16xf32>
    %25 = vector.extract_strided_slice %23 {offsets = [0, 16, 0], sizes = [14, 16, 16], strides = [1, 1, 1]} : vector<14x32x16xf32> to vector<14x16x16xf32>
    %26 = arith.maximumf %24, %25 : vector<14x16x16xf32>
    %27 = vector.extract_strided_slice %26 {offsets = [0, 0, 0], sizes = [12, 16, 16], strides = [1, 1, 1]} : vector<14x16x16xf32> to vector<12x16x16xf32>
    %28 = vector.shape_cast %27 : vector<12x16x16xf32> to vector<192x16xf32>
    %c0_14 = arith.constant 0 : index
    %c0_15 = arith.constant 0 : index
    %c0_16 = arith.constant 0 : index
    %29 = vector.load %arg4[%c0_14, %c0_15, %c0_16] : memref<3x16x16xf32, #tpu.memory_space<vmem>>, vector<1x16x16xf32>
    %30 = vector.shape_cast %29 : vector<1x16x16xf32> to vector<16x16xf32>
    %cst_17 = arith.constant dense<0.000000e+00> : vector<192x16xf32>
    %31 = tpu.matmul %28, %30, %cst_17 {dimension_numbers = #tpu.dot_dimension_numbers<[1], [0], [0], [1], [0, 0, 1, 1], [], []>} : vector<192x16xf32>, vector<16x16xf32>, vector<192x16xf32> -> vector<192x16xf32>
    %32 = vector.extract_strided_slice %26 {offsets = [1, 0, 0], sizes = [12, 16, 16], strides = [1, 1, 1]} : vector<14x16x16xf32> to vector<12x16x16xf32>
    %33 = vector.shape_cast %32 : vector<12x16x16xf32> to vector<192x16xf32>
    %c1_18 = arith.constant 1 : index
    %c0_19 = arith.constant 0 : index
    %c0_20 = arith.constant 0 : index
    %34 = vector.load %arg4[%c1_18, %c0_19, %c0_20] : memref<3x16x16xf32, #tpu.memory_space<vmem>>, vector<1x16x16xf32>
    %35 = vector.shape_cast %34 : vector<1x16x16xf32> to vector<16x16xf32>
    %cst_21 = arith.constant dense<0.000000e+00> : vector<192x16xf32>
    %36 = tpu.matmul %33, %35, %cst_21 {dimension_numbers = #tpu.dot_dimension_numbers<[1], [0], [0], [1], [0, 0, 1, 1], [], []>} : vector<192x16xf32>, vector<16x16xf32>, vector<192x16xf32> -> vector<192x16xf32>
    %37 = arith.addf %31, %36 : vector<192x16xf32>
    %38 = vector.extract_strided_slice %26 {offsets = [2, 0, 0], sizes = [12, 16, 16], strides = [1, 1, 1]} : vector<14x16x16xf32> to vector<12x16x16xf32>
    %39 = vector.shape_cast %38 : vector<12x16x16xf32> to vector<192x16xf32>
    %c2_22 = arith.constant 2 : index
    %c0_23 = arith.constant 0 : index
    %c0_24 = arith.constant 0 : index
    %40 = vector.load %arg4[%c2_22, %c0_23, %c0_24] : memref<3x16x16xf32, #tpu.memory_space<vmem>>, vector<1x16x16xf32>
    %41 = vector.shape_cast %40 : vector<1x16x16xf32> to vector<16x16xf32>
    %cst_25 = arith.constant dense<0.000000e+00> : vector<192x16xf32>
    %42 = tpu.matmul %39, %41, %cst_25 {dimension_numbers = #tpu.dot_dimension_numbers<[1], [0], [0], [1], [0, 0, 1, 1], [], []>} : vector<192x16xf32>, vector<16x16xf32>, vector<192x16xf32> -> vector<192x16xf32>
    %43 = arith.addf %37, %42 : vector<192x16xf32>
    %c0_26 = arith.constant 0 : index
    %c0_27 = arith.constant 0 : index
    %44 = vector.load %arg5[%c0_26, %c0_27] : memref<1x16xf32, #tpu.memory_space<vmem>>, vector<1x16xf32>
    %45 = vector.broadcast %44 : vector<1x16xf32> to vector<192x16xf32>
    %46 = arith.addf %43, %45 : vector<192x16xf32>
    %cst_28 = arith.constant 0.000000e+00 : f32
    %47 = vector.broadcast %cst_28 : f32 to vector<192x16xf32>
    %48 = arith.maximumf %46, %47 : vector<192x16xf32>
    %49 = vector.shape_cast %48 : vector<192x16xf32> to vector<6x32x16xf32>
    %50 = vector.extract_strided_slice %49 {offsets = [0, 0, 0], sizes = [6, 16, 16], strides = [1, 1, 1]} : vector<6x32x16xf32> to vector<6x16x16xf32>
    %51 = vector.extract_strided_slice %49 {offsets = [0, 16, 0], sizes = [6, 16, 16], strides = [1, 1, 1]} : vector<6x32x16xf32> to vector<6x16x16xf32>
    %52 = arith.maximumf %50, %51 : vector<6x16x16xf32>
    %53 = vector.extract_strided_slice %52 {offsets = [0, 0, 0], sizes = [1, 16, 16], strides = [1, 1, 1]} : vector<6x16x16xf32> to vector<1x16x16xf32>
    %54 = vector.shape_cast %53 : vector<1x16x16xf32> to vector<16x16xf32>
    %c0_29 = arith.constant 0 : index
    %c0_30 = arith.constant 0 : index
    %c0_31 = arith.constant 0 : index
    %55 = vector.load %arg6[%c0_29, %c0_30, %c0_31] : memref<6x16x60xf32, #tpu.memory_space<vmem>>, vector<1x16x60xf32>
    %56 = vector.shape_cast %55 : vector<1x16x60xf32> to vector<16x60xf32>
    %cst_32 = arith.constant dense<0.000000e+00> : vector<16x60xf32>
    %57 = tpu.matmul %54, %56, %cst_32 {dimension_numbers = #tpu.dot_dimension_numbers<[1], [0], [0], [1], [0, 0, 1, 1], [], []>} : vector<16x16xf32>, vector<16x60xf32>, vector<16x60xf32> -> vector<16x60xf32>
    %58 = vector.extract_strided_slice %52 {offsets = [1, 0, 0], sizes = [1, 16, 16], strides = [1, 1, 1]} : vector<6x16x16xf32> to vector<1x16x16xf32>
    %59 = vector.shape_cast %58 : vector<1x16x16xf32> to vector<16x16xf32>
    %c1_33 = arith.constant 1 : index
    %c0_34 = arith.constant 0 : index
    %c0_35 = arith.constant 0 : index
    %60 = vector.load %arg6[%c1_33, %c0_34, %c0_35] : memref<6x16x60xf32, #tpu.memory_space<vmem>>, vector<1x16x60xf32>
    %61 = vector.shape_cast %60 : vector<1x16x60xf32> to vector<16x60xf32>
    %cst_36 = arith.constant dense<0.000000e+00> : vector<16x60xf32>
    %62 = tpu.matmul %59, %61, %cst_36 {dimension_numbers = #tpu.dot_dimension_numbers<[1], [0], [0], [1], [0, 0, 1, 1], [], []>} : vector<16x16xf32>, vector<16x60xf32>, vector<16x60xf32> -> vector<16x60xf32>
    %63 = arith.addf %57, %62 : vector<16x60xf32>
    %64 = vector.extract_strided_slice %52 {offsets = [2, 0, 0], sizes = [1, 16, 16], strides = [1, 1, 1]} : vector<6x16x16xf32> to vector<1x16x16xf32>
    %65 = vector.shape_cast %64 : vector<1x16x16xf32> to vector<16x16xf32>
    %c2_37 = arith.constant 2 : index
    %c0_38 = arith.constant 0 : index
    %c0_39 = arith.constant 0 : index
    %66 = vector.load %arg6[%c2_37, %c0_38, %c0_39] : memref<6x16x60xf32, #tpu.memory_space<vmem>>, vector<1x16x60xf32>
    %67 = vector.shape_cast %66 : vector<1x16x60xf32> to vector<16x60xf32>
    %cst_40 = arith.constant dense<0.000000e+00> : vector<16x60xf32>
    %68 = tpu.matmul %65, %67, %cst_40 {dimension_numbers = #tpu.dot_dimension_numbers<[1], [0], [0], [1], [0, 0, 1, 1], [], []>} : vector<16x16xf32>, vector<16x60xf32>, vector<16x60xf32> -> vector<16x60xf32>
    %69 = arith.addf %63, %68 : vector<16x60xf32>
    %70 = vector.extract_strided_slice %52 {offsets = [3, 0, 0], sizes = [1, 16, 16], strides = [1, 1, 1]} : vector<6x16x16xf32> to vector<1x16x16xf32>
    %71 = vector.shape_cast %70 : vector<1x16x16xf32> to vector<16x16xf32>
    %c3 = arith.constant 3 : index
    %c0_41 = arith.constant 0 : index
    %c0_42 = arith.constant 0 : index
    %72 = vector.load %arg6[%c3, %c0_41, %c0_42] : memref<6x16x60xf32, #tpu.memory_space<vmem>>, vector<1x16x60xf32>
    %73 = vector.shape_cast %72 : vector<1x16x60xf32> to vector<16x60xf32>
    %cst_43 = arith.constant dense<0.000000e+00> : vector<16x60xf32>
    %74 = tpu.matmul %71, %73, %cst_43 {dimension_numbers = #tpu.dot_dimension_numbers<[1], [0], [0], [1], [0, 0, 1, 1], [], []>} : vector<16x16xf32>, vector<16x60xf32>, vector<16x60xf32> -> vector<16x60xf32>
    %75 = arith.addf %69, %74 : vector<16x60xf32>
    %76 = vector.extract_strided_slice %52 {offsets = [4, 0, 0], sizes = [1, 16, 16], strides = [1, 1, 1]} : vector<6x16x16xf32> to vector<1x16x16xf32>
    %77 = vector.shape_cast %76 : vector<1x16x16xf32> to vector<16x16xf32>
    %c4 = arith.constant 4 : index
    %c0_44 = arith.constant 0 : index
    %c0_45 = arith.constant 0 : index
    %78 = vector.load %arg6[%c4, %c0_44, %c0_45] : memref<6x16x60xf32, #tpu.memory_space<vmem>>, vector<1x16x60xf32>
    %79 = vector.shape_cast %78 : vector<1x16x60xf32> to vector<16x60xf32>
    %cst_46 = arith.constant dense<0.000000e+00> : vector<16x60xf32>
    %80 = tpu.matmul %77, %79, %cst_46 {dimension_numbers = #tpu.dot_dimension_numbers<[1], [0], [0], [1], [0, 0, 1, 1], [], []>} : vector<16x16xf32>, vector<16x60xf32>, vector<16x60xf32> -> vector<16x60xf32>
    %81 = arith.addf %75, %80 : vector<16x60xf32>
    %82 = vector.extract_strided_slice %52 {offsets = [5, 0, 0], sizes = [1, 16, 16], strides = [1, 1, 1]} : vector<6x16x16xf32> to vector<1x16x16xf32>
    %83 = vector.shape_cast %82 : vector<1x16x16xf32> to vector<16x16xf32>
    %c5 = arith.constant 5 : index
    %c0_47 = arith.constant 0 : index
    %c0_48 = arith.constant 0 : index
    %84 = vector.load %arg6[%c5, %c0_47, %c0_48] : memref<6x16x60xf32, #tpu.memory_space<vmem>>, vector<1x16x60xf32>
    %85 = vector.shape_cast %84 : vector<1x16x60xf32> to vector<16x60xf32>
    %cst_49 = arith.constant dense<0.000000e+00> : vector<16x60xf32>
    %86 = tpu.matmul %83, %85, %cst_49 {dimension_numbers = #tpu.dot_dimension_numbers<[1], [0], [0], [1], [0, 0, 1, 1], [], []>} : vector<16x16xf32>, vector<16x60xf32>, vector<16x60xf32> -> vector<16x60xf32>
    %87 = arith.addf %81, %86 : vector<16x60xf32>
    %c0_50 = arith.constant 0 : index
    %c0_51 = arith.constant 0 : index
    %88 = vector.load %arg7[%c0_50, %c0_51] : memref<1x60xf32, #tpu.memory_space<vmem>>, vector<1x60xf32>
    %89 = vector.broadcast %88 : vector<1x60xf32> to vector<16x60xf32>
    %90 = arith.addf %87, %89 : vector<16x60xf32>
    %cst_52 = arith.constant 0.000000e+00 : f32
    %91 = vector.broadcast %cst_52 : f32 to vector<16x60xf32>
    %92 = arith.maximumf %90, %91 : vector<16x60xf32>
    %c0_53 = arith.constant 0 : index
    %c0_54 = arith.constant 0 : index
    %93 = vector.load %arg8[%c0_53, %c0_54] : memref<60x128xf32, #tpu.memory_space<vmem>>, vector<60x128xf32>
    %cst_55 = arith.constant dense<0.000000e+00> : vector<16x128xf32>
    %94 = tpu.matmul %92, %93, %cst_55 {dimension_numbers = #tpu.dot_dimension_numbers<[1], [0], [0], [1], [0, 0, 1, 1], [], []>} : vector<16x60xf32>, vector<60x128xf32>, vector<16x128xf32> -> vector<16x128xf32>
    %c0_56 = arith.constant 0 : index
    %c0_57 = arith.constant 0 : index
    %95 = vector.load %arg9[%c0_56, %c0_57] : memref<1x128xf32, #tpu.memory_space<vmem>>, vector<1x128xf32>
    %96 = vector.broadcast %95 : vector<1x128xf32> to vector<16x128xf32>
    %97 = arith.addf %94, %96 : vector<16x128xf32>
    %c0_58 = arith.constant 0 : index
    %c0_59 = arith.constant 0 : index
    %98 = vector.load %arg10[%c0_58, %c0_59] : memref<16x128xf32, #tpu.memory_space<vmem>>, vector<16x128xf32>
    tpu.vector_store %arg10[%c0_58, %c0_59], %97 {strides = array<i32>} : memref<16x128xf32, #tpu.memory_space<vmem>>, vector<16x128xf32>,
    return
  }
  func.func @transform_0(%arg0: i32) -> (i32, i32, i32) {
    %c0_i32 = arith.constant 0 : i32
    %c0_i32_0 = arith.constant 0 : i32
    %c0_i32_1 = arith.constant 0 : i32
    return %c0_i32, %arg0, %c0_i32_0 : i32, i32, i32
  }
  func.func @transform_1(%arg0: i32) -> (i32, i32, i32) {
    %c0_i32 = arith.constant 0 : i32
    %c0_i32_0 = arith.constant 0 : i32
    %c0_i32_1 = arith.constant 0 : i32
    %c0_i32_2 = arith.constant 0 : i32
    return %c0_i32, %c0_i32_0, %c0_i32_1 : i32, i32, i32
  }
  func.func @transform_2(%arg0: i32) -> (i32, i32) {
    %c0_i32 = arith.constant 0 : i32
    %c0_i32_0 = arith.constant 0 : i32
    %c0_i32_1 = arith.constant 0 : i32
    return %c0_i32, %c0_i32_0 : i32, i32
  }
  func.func @transform_3(%arg0: i32) -> (i32, i32, i32) {
    %c0_i32 = arith.constant 0 : i32
    %c0_i32_0 = arith.constant 0 : i32
    %c0_i32_1 = arith.constant 0 : i32
    %c0_i32_2 = arith.constant 0 : i32
    return %c0_i32, %c0_i32_0, %c0_i32_1 : i32, i32, i32
  }
  func.func @transform_4(%arg0: i32) -> (i32, i32) {
    %c0_i32 = arith.constant 0 : i32
    %c0_i32_0 = arith.constant 0 : i32
    %c0_i32_1 = arith.constant 0 : i32
    return %c0_i32, %c0_i32_0 : i32, i32
  }
  func.func @transform_5(%arg0: i32) -> (i32, i32, i32) {
    %c0_i32 = arith.constant 0 : i32
    %c0_i32_0 = arith.constant 0 : i32
    %c0_i32_1 = arith.constant 0 : i32
    %c0_i32_2 = arith.constant 0 : i32
    return %c0_i32, %c0_i32_0, %c0_i32_1 : i32, i32, i32
  }
  func.func @transform_6(%arg0: i32) -> (i32, i32) {
    %c0_i32 = arith.constant 0 : i32
    %c0_i32_0 = arith.constant 0 : i32
    %c0_i32_1 = arith.constant 0 : i32
    return %c0_i32, %c0_i32_0 : i32, i32
  }
  func.func @transform_7(%arg0: i32) -> (i32, i32) {
    %c0_i32 = arith.constant 0 : i32
    %c0_i32_0 = arith.constant 0 : i32
    %c0_i32_1 = arith.constant 0 : i32
    return %c0_i32, %c0_i32_0 : i32, i32
  }
  func.func @transform_8(%arg0: i32) -> (i32, i32) {
    %c0_i32 = arith.constant 0 : i32
    %c0_i32_0 = arith.constant 0 : i32
    %c0_i32_1 = arith.constant 0 : i32
    return %c0_i32, %c0_i32_0 : i32, i32
  }
  func.func @transform_9(%arg0: i32) -> (i32, i32) {
    %c0_i32 = arith.constant 0 : i32
    %c0_i32_0 = arith.constant 0 : i32
    return %arg0, %c0_i32 : i32, i32
  }
}

</mosaic_0001>

<bundles_post_ra>
// kernel: tpu_custom_call.1
= control target key start
LH: loop header
LB: loop body
LE: loop exit
PB: predicated region body
PF: predicated region fallthrough
CT: control target
= control target key end

     0   :  { %vm96_vm0 = vcmask 64512   ;;  %s5388_s0 = inlined_call_operand.vmem [shape: f32[30,16,8], index: 0, kind: input, shape index: {}]   ;;  %s5389_s1 = inlined_call_operand.vmem [shape: f32[3,8,16], index: 1, kind: input, shape index: {}]   ;;  %s5390_s2 = inlined_call_operand.vmem [shape: f32[1,16], index: 2, kind: input, shape index: {}]   ;;  %s5391_s3 = inlined_call_operand.vmem [shape: f32[3,16,16], index: 3, kind: input, shape index: {}]   ;;  %s5392_s4 = inlined_call_operand.vmem [shape: f32[1,16], index: 4, kind: input, shape index: {}]   ;;  %s5393_s5 = inlined_call_operand.vmem [shape: f32[6,16,60], index: 5, kind: input, shape index: {}]   ;;  %s5394_s6 = inlined_call_operand.vmem [shape: f32[1,60], index: 6, kind: input, shape index: {}]   ;;  %s5395_s7 = inlined_call_operand.vmem [shape: f32[60,128], index: 7, kind: input, shape index: {}]   ;;  %s5396_s8 = inlined_call_operand.vmem [shape: f32[1,128], index: 8, kind: input, shape index: {}]   ;;  %s5397_s9 = inlined_call_operand.hbm [shape: f32[16,128], index: 9, kind: output, shape index: {}]  }
   0x1   :  { %v2897_v0 = vld [vmem:[%s5389_s1 + $0x8] sm:$0xff]  ;;  %v35_v1 = vld [vmem:[%s5388_s0 + $0x10] sm:$0xff]  ;;  %v36_v2 = vld [vmem:[%s5388_s0 + $0x18] sm:$0xff] }
   0x2   :  { %3455 = vmatprep.subr.mxu0 %v2897_v0  ;;  %3457 = vmatprep.mubr.msk.f32.mxu0 %vm96_vm0, %v35_v1  ;;  %v93_v3 = vld [vmem:[%s5389_s1] sm:$0xff]  ;;  %v3998_v5 = vld [vmem:[%s5388_s0 + $0x28] sm:$0xff]  ;;  %v4004_v6 = vld [vmem:[%s5388_s0 + $0x30] sm:$0xff] }
   0x3   :  { %v3990_v4 = vld [vmem:[%s5388_s0 + $0x20] sm:$0xff]  ;;  %3456 = vmatpush3.msra.mxu0 %v2897_v0  ;;  %3894 = vmatprep.subr.mxu1 %v93_v3  ;;  %v4016_v7 = vld [vmem:[%s5388_s0 + $0x38] sm:$0xff]  ;;  %v4034_v9 = vld [vmem:[%s5388_s0 + $0x48] sm:$0xff] }
   0x4   :  { %3458 = vmatmul.mubr.msk.f32.vlgmr.msra.gmra.mxu0 %vm96_vm0, %v36_v2  ;;  %3541 = vmatprep.subr.mxu0 %v93_v3  ;;  %v4021_v8 = vld [vmem:[%s5388_s0 + $0x40] sm:$0xff]  ;;  %v4039_v10 = vld [vmem:[%s5388_s0 + $0x50] sm:$0xff]  ;;  %v4052_v11 = vld [vmem:[%s5388_s0 + $0x58] sm:$0xff] }
   0x5   :  { %3542 = vmatpush3.msra.mxu0 %v93_v3  ;;  %3460 = vmatprep.mubr.msk.f32.mxu0 %vm96_vm0, %v3990_v4  ;;  %v4057_v12 = vld [vmem:[%s5388_s0 + $0x60] sm:$0xff]  ;;  %v4070_v13 = vld [vmem:[%s5388_s0 + $0x68] sm:$0xff]  ;;  %v4075_v14 = vld [vmem:[%s5389_s1 + $0x10] sm:$0xff] }
   0x6   :  { %3895 = vmatpush3.msra.mxu1 %v93_v3  ;;  %3546 = vmatprep.mubr.msk.f32.mxu1 %vm96_vm0, %v35_v1 }
   0x7   :  { %3547 = vmatmul.mubr.msk.f32.vlgmr.msra.gmra.mxu1 %vm96_vm0, %v36_v2 }
   0x8   :  { %3461 = vmatmul.mubr.msk.f32.gmra.mxu0 %vm96_vm0, %v3998_v5  ;;  %3549 = vmatprep.mubr.msk.f32.mxu1 %vm96_vm0, %v3990_v4 }
   0x9   :  { %3463 = vmatprep.mubr.msk.f32.mxu0 %vm96_vm0, %v4004_v6 }
   0xb   :  { %3550 = vmatmul.mubr.msk.f32.gmra.mxu1 %vm96_vm0, %v3998_v5 }
   0xc   :  { %3464 = vmatmul.mubr.msk.f32.gmra.mxu0 %vm96_vm0, %v4016_v7  ;;  %3552 = vmatprep.mubr.msk.f32.mxu1 %vm96_vm0, %v4004_v6 }
   0xd   :  { %3466 = vmatprep.mubr.msk.f32.mxu0 %vm96_vm0, %v4021_v8 }
   0xf   :  { %3553 = vmatmul.mubr.msk.f32.gmra.mxu1 %vm96_vm0, %v4016_v7 }
  0x10   :  { %3467 = vmatmul.mubr.msk.f32.gmra.mxu0 %vm96_vm0, %v4034_v9  ;;  %3555 = vmatprep.mubr.msk.f32.mxu1 %vm96_vm0, %v4021_v8 }
  0x11   :  { %3469 = vmatprep.mubr.msk.f32.mxu0 %vm96_vm0, %v4039_v10 }
  0x13   :  { %3556 = vmatmul.mubr.msk.f32.gmra.mxu1 %vm96_vm0, %v4034_v9 }
  0x14   :  { %3470 = vmatmul.mubr.msk.f32.gmra.mxu0 %vm96_vm0, %v4052_v11  ;;  %3558 = vmatprep.mubr.msk.f32.mxu1 %vm96_vm0, %v4039_v10 }
  0x15   :  { %3472 = vmatprep.mubr.msk.f32.mxu0 %vm96_vm0, %v4057_v12 }
  0x16   :  { %14 = vsyncpa [#allocation3], 0  ;;  %v4080_v15 = vld [vmem:[%s5388_s0 + $0x70] sm:$0xff]  ;;  %3627 = vmatprep.subr.mxu0 %v4075_v14  ;;  %v4094_v16 = vld [vmem:[%s5388_s0 + $0x78] sm:$0xff]  ;;  %vm1522_vm1 = vcmask 130048   ;;  %vm2800_vm2 = vcmask 1043456  }
  0x17   :  { %3559 = vmatmul.mubr.msk.f32.gmra.mxu1 %vm96_vm0, %v4052_v11  ;;  %v4099_v17 = vld [vmem:[%s5388_s0 + $0x80] sm:$0xff]  ;;  %v4112_v18 = vld [vmem:[%s5388_s0 + $0x88] sm:$0xff]  ;;  %v4117_v19 = vld [vmem:[%s5388_s0 + $0x90] sm:$0xff]  ;;  %vm2793_vm3 = vcmask 490496   ;;  %s3921_s30 = smov [#allocation2]  }
  0x18   :  { %3473 = vmatmul.mubr.msk.f32.gmra.mxu0 %vm96_vm0, %v4070_v13  ;;  %3561 = vmatprep.mubr.msk.f32.mxu1 %vm96_vm0, %v4057_v12  ;;  %v4130_v20 = vld [vmem:[%s5388_s0 + $0x98] sm:$0xff]  ;;  %v4135_v21 = vld [vmem:[%s5388_s0 + $0xa0] sm:$0xff]  ;;  %v4148_v22 = vld [vmem:[%s5388_s0 + $0xa8] sm:$0xff]  ;;  %s2886_s10 = sshll.u32 %s3921_s30, 4  ;;  %s2887_s10 = int_to_ptr.vmem [resolvable:$true] %s2886_s10 }
  0x19   :  { %3475 = vmatprep.mubr.msk.f32.mxu0 %vm96_vm0, %v4080_v15  ;;  %v4153_v23 = vld [vmem:[%s5388_s0 + $0xb0] sm:$0xff]  ;;  %v4166_v24 = vld [vmem:[%s5388_s0 + $0xb8] sm:$0xff]  ;;  %v4171_v25 = vld [vmem:[%s5388_s0 + $0xc0] sm:$0xff]  ;;  %p3904_p1 = scmp.lt.s32.totalorder %s2887_s10, %s2887_s10 }
  0x1a   :  { %v4184_v26 = vld [vmem:[%s5388_s0 + $0xc8] sm:$0xff]  ;;  %v4189_v27 = vld [vmem:[%s5388_s0 + $0xd0] sm:$0xff]  ;;  %v4202_v28 = vld [vmem:[%s5388_s0 + $0xd8] sm:$0xff] }
  0x1b   :  { %3562 = vmatmul.mubr.msk.f32.gmra.mxu1 %vm96_vm0, %v4070_v13  ;;  %v4207_v29 = vld [vmem:[%s5388_s0 + $0xe0] sm:$0xff]  ;;  %v4220_v30 = vld [vmem:[%s5388_s0 + $0xe8] sm:$0xff]  ;;  %v4225_v31 = vld [vmem:[%s5388_s0 + $0xf0] sm:$0xff] }
  0x1c   :  { %3476 = vmatmul.mubr.msk.f32.gmra.mxu0 %vm96_vm0, %v4094_v16  ;;  %3564 = vmatprep.mubr.msk.f32.mxu1 %vm96_vm0, %v4080_v15  ;;  %v4238_v32 = vld [vmem:[%s5388_s0 + $0xf8] sm:$0xff]  ;;  %v4243_v33 = vld [vmem:[%s5388_s0 + $0x100] sm:$0xff]  ;;  %v4256_v34 = vld [vmem:[%s5388_s0 + $0x108] sm:$0xff] }
  0x1d   :  { %3478 = vmatprep.mubr.msk.f32.mxu0 %vm96_vm0, %v4099_v17  ;;  %v4261_v35 = vld [vmem:[%s5388_s0 + $0x110] sm:$0xff]  ;;  %v4274_v36 = vld [vmem:[%s5388_s0 + $0x118] sm:$0xff]  ;;  %v4279_v37 = vld [vmem:[%s5388_s0 + $0x120] sm:$0xff] }
  0x1e   :  { %v4292_v38 = vld [vmem:[%s5388_s0 + $0x128] sm:$0xff]  ;;  %v4297_v39 = vld [vmem:[%s5388_s0 + $0x130] sm:$0xff]  ;;  %v4310_v40 = vld [vmem:[%s5388_s0 + $0x138] sm:$0xff] }
  0x1f   :  { %3565 = vmatmul.mubr.msk.f32.gmra.mxu1 %vm96_vm0, %v4094_v16  ;;  %v4315_v41 = vld [vmem:[%s5388_s0 + $0x140] sm:$0xff]  ;;  %v4328_v42 = vld [vmem:[%s5388_s0 + $0x148] sm:$0xff]  ;;  %v4333_v43 = vld [vmem:[%s5388_s0 + $0x150] sm:$0xff] }
  0x20   :  { %3479 = vmatmul.mubr.msk.f32.gmra.mxu0 %vm96_vm0, %v4112_v18  ;;  %3567 = vmatprep.mubr.msk.f32.mxu1 %vm96_vm0, %v4099_v17  ;;  %v4346_v44 = vld [vmem:[%s5388_s0 + $0x158] sm:$0xff]  ;;  %v4351_v45 = vld [vmem:[%s5388_s0 + $0x160] sm:$0xff]  ;;  %v4364_v46 = vld [vmem:[%s5388_s0 + $0x168] sm:$0xff] }
  0x21   :  { %3481 = vmatprep.mubr.msk.f32.mxu0 %vm96_vm0, %v4117_v19  ;;  %v4369_v47 = vld [vmem:[%s5388_s0 + $0x170] sm:$0xff]  ;;  %v4382_v48 = vld [vmem:[%s5388_s0 + $0x178] sm:$0xff]  ;;  %v4387_v49 = vld [vmem:[%s5388_s0 + $0x180] sm:$0xff] }
  0x22   :  { %v4400_v50 = vld [vmem:[%s5388_s0 + $0x188] sm:$0xff]  ;;  %v4405_v51 = vld [vmem:[%s5388_s0 + $0x190] sm:$0xff]  ;;  %v4418_v52 = vld [vmem:[%s5388_s0 + $0x198] sm:$0xff] }
  0x23   :  { %3568 = vmatmul.mubr.msk.f32.gmra.mxu1 %vm96_vm0, %v4112_v18  ;;  %v4423_v53 = vld [vmem:[%s5388_s0 + $0x1a0] sm:$0xff]  ;;  %v4436_v54 = vld [vmem:[%s5388_s0 + $0x1a8] sm:$0xff]  ;;  %v4441_v55 = vld [vmem:[%s5388_s0 + $0x1b0] sm:$0xff] }
  0x24   :  { %3482 = vmatmul.mubr.msk.f32.gmra.mxu0 %vm96_vm0, %v4130_v20  ;;  %3570 = vmatprep.mubr.msk.f32.mxu1 %vm96_vm0, %v4117_v19  ;;  %v4454_v56 = vld [vmem:[%s5388_s0 + $0x1b8] sm:$0xff]  ;;  %v4459_v57 = vld [vmem:[%s5388_s0 + $0x1c0] sm:$0xff]  ;;  %v4472_v58 = vld [vmem:[%s5388_s0 + $0x1c8] sm:$0xff] }
  0x25   :  { %3484 = vmatprep.mubr.msk.f32.mxu0 %vm96_vm0, %v4135_v21  ;;  %v33_v59 = vld [vmem:[%s5388_s0] sm:$0xff]  ;;  %v34_v60 = vld [vmem:[%s5388_s0 + $0x8] sm:$0xff]  ;;  %v3069_v61 = vld [vmem:[%s5391_s3 + $0x18] sm:$0xff] }
  0x26   :  { %3713 = vmatprep.subr.mxu1 %v3069_v61 }
  0x27   :  { %3571 = vmatmul.mubr.msk.f32.gmra.mxu1 %vm96_vm0, %v4130_v20 }
  0x28   :  { %3485 = vmatmul.mubr.msk.f32.gmra.mxu0 %vm96_vm0, %v4148_v22  ;;  %3573 = vmatprep.mubr.msk.f32.mxu1 %vm96_vm0, %v4135_v21 }
  0x29   :  { %3487 = vmatprep.mubr.msk.f32.mxu0 %vm96_vm0, %v4153_v23  ;;  %3714 = vmatpush3.msra.mxu1 %v3069_v61 }
  0x2b   :  { %3574 = vmatmul.mubr.msk.f32.gmra.mxu1 %vm96_vm0, %v4148_v22 }
  0x2c   :  { %3488 = vmatmul.mubr.msk.f32.gmra.mxu0 %vm96_vm0, %v4166_v24  ;;  %3576 = vmatprep.mubr.msk.f32.mxu1 %vm96_vm0, %v4153_v23 }
  0x2d   :  { %3490 = vmatprep.mubr.msk.f32.mxu0 %vm96_vm0, %v4171_v25 }
  0x2f   :  { %3577 = vmatmul.mubr.msk.f32.gmra.mxu1 %vm96_vm0, %v4166_v24 }
  0x30   :  { %3491 = vmatmul.mubr.msk.f32.gmra.mxu0 %vm96_vm0, %v4184_v26  ;;  %3579 = vmatprep.mubr.msk.f32.mxu1 %vm96_vm0, %v4171_v25 }
  0x31   :  { %3493 = vmatprep.mubr.msk.f32.mxu0 %vm96_vm0, %v4189_v27 }
  0x33   :  { %3580 = vmatmul.mubr.msk.f32.gmra.mxu1 %vm96_vm0, %v4184_v26 }
  0x34   :  { %3494 = vmatmul.mubr.msk.f32.gmra.mxu0 %vm96_vm0, %v4202_v28  ;;  %3582 = vmatprep.mubr.msk.f32.mxu1 %vm96_vm0, %v4189_v27 }
  0x35   :  { %3496 = vmatprep.mubr.msk.f32.mxu0 %vm96_vm0, %v4207_v29 }
  0x37   :  { %3583 = vmatmul.mubr.msk.f32.gmra.mxu1 %vm96_vm0, %v4202_v28 }
  0x38   :  { %3497 = vmatmul.mubr.msk.f32.gmra.mxu0 %vm96_vm0, %v4220_v30  ;;  %3585 = vmatprep.mubr.msk.f32.mxu1 %vm96_vm0, %v4207_v29 }
  0x39   :  { %3499 = vmatprep.mubr.msk.f32.mxu0 %vm96_vm0, %v4225_v31 }
  0x3b   :  { %3586 = vmatmul.mubr.msk.f32.gmra.mxu1 %vm96_vm0, %v4220_v30 }
  0x3c   :  { %3500 = vmatmul.mubr.msk.f32.gmra.mxu0 %vm96_vm0, %v4238_v32  ;;  %3588 = vmatprep.mubr.msk.f32.mxu1 %vm96_vm0, %v4225_v31 }
  0x3d   :  { %3502 = vmatprep.mubr.msk.f32.mxu0 %vm96_vm0, %v4243_v33 }
  0x3f   :  { %3589 = vmatmul.mubr.msk.f32.gmra.mxu1 %vm96_vm0, %v4238_v32 }
  0x40   :  { %3503 = vmatmul.mubr.msk.f32.gmra.mxu0 %vm96_vm0, %v4256_v34  ;;  %3591 = vmatprep.mubr.msk.f32.mxu1 %vm96_vm0, %v4243_v33 }
  0x41   :  { %3505 = vmatprep.mubr.msk.f32.mxu0 %vm96_vm0, %v4261_v35 }
  0x43   :  { %3592 = vmatmul.mubr.msk.f32.gmra.mxu1 %vm96_vm0, %v4256_v34 }
  0x44   :  { %3506 = vmatmul.mubr.msk.f32.gmra.mxu0 %vm96_vm0, %v4274_v36  ;;  %3594 = vmatprep.mubr.msk.f32.mxu1 %vm96_vm0, %v4261_v35 }
  0x45   :  { %3508 = vmatprep.mubr.msk.f32.mxu0 %vm96_vm0, %v4279_v37 }
  0x47   :  { %3595 = vmatmul.mubr.msk.f32.gmra.mxu1 %vm96_vm0, %v4274_v36 }
  0x48   :  { %3509 = vmatmul.mubr.msk.f32.gmra.mxu0 %vm96_vm0, %v4292_v38  ;;  %3597 = vmatprep.mubr.msk.f32.mxu1 %vm96_vm0, %v4279_v37 }
  0x49   :  { %3511 = vmatprep.mubr.msk.f32.mxu0 %vm96_vm0, %v4297_v39 }
  0x4b   :  { %3598 = vmatmul.mubr.msk.f32.gmra.mxu1 %vm96_vm0, %v4292_v38 }
  0x4c   :  { %3512 = vmatmul.mubr.msk.f32.gmra.mxu0 %vm96_vm0, %v4310_v40  ;;  %3600 = vmatprep.mubr.msk.f32.mxu1 %vm96_vm0, %v4297_v39 }
  0x4d   :  { %3514 = vmatprep.mubr.msk.f32.mxu0 %vm96_vm0, %v4315_v41 }
  0x4f   :  { %3601 = vmatmul.mubr.msk.f32.gmra.mxu1 %vm96_vm0, %v4310_v40 }
  0x50   :  { %3515 = vmatmul.mubr.msk.f32.gmra.mxu0 %vm96_vm0, %v4328_v42  ;;  %3603 = vmatprep.mubr.msk.f32.mxu1 %vm96_vm0, %v4315_v41 }
  0x51   :  { %3517 = vmatprep.mubr.msk.f32.mxu0 %vm96_vm0, %v4333_v43 }
  0x53   :  { %3604 = vmatmul.mubr.msk.f32.gmra.mxu1 %vm96_vm0, %v4328_v42 }
  0x54   :  { %3518 = vmatmul.mubr.msk.f32.gmra.mxu0 %vm96_vm0, %v4346_v44  ;;  %3606 = vmatprep.mubr.msk.f32.mxu1 %vm96_vm0, %v4333_v43 }
  0x55   :  { %3520 = vmatprep.mubr.msk.f32.mxu0 %vm96_vm0, %v4351_v45 }
  0x57   :  { %3607 = vmatmul.mubr.msk.f32.gmra.mxu1 %vm96_vm0, %v4346_v44 }
  0x58   :  { %3521 = vmatmul.mubr.msk.f32.gmra.mxu0 %vm96_vm0, %v4364_v46  ;;  %3609 = vmatprep.mubr.msk.f32.mxu1 %vm96_vm0, %v4351_v45 }
  0x59   :  { %3523 = vmatprep.mubr.msk.f32.mxu0 %vm96_vm0, %v4369_v47 }
  0x5b   :  { %3610 = vmatmul.mubr.msk.f32.gmra.mxu1 %vm96_vm0, %v4364_v46 }
  0x5c   :  { %3524 = vmatmul.mubr.msk.f32.gmra.mxu0 %vm96_vm0, %v4382_v48  ;;  %3612 = vmatprep.mubr.msk.f32.mxu1 %vm96_vm0, %v4369_v47 }
  0x5d   :  { %3526 = vmatprep.mubr.msk.f32.mxu0 %vm96_vm0, %v4387_v49 }
  0x5f   :  { %3613 = vmatmul.mubr.msk.f32.gmra.mxu1 %vm96_vm0, %v4382_v48 }
  0x60   :  { %3527 = vmatmul.mubr.msk.f32.gmra.mxu0 %vm96_vm0, %v4400_v50  ;;  %3615 = vmatprep.mubr.msk.f32.mxu1 %vm96_vm0, %v4387_v49 }
  0x61   :  { %3529 = vmatprep.mubr.msk.f32.mxu0 %vm96_vm0, %v4405_v51 }
  0x63   :  { %3616 = vmatmul.mubr.msk.f32.gmra.mxu1 %vm96_vm0, %v4400_v50 }
  0x64   :  { %3530 = vmatmul.mubr.msk.f32.gmra.mxu0 %vm96_vm0, %v4418_v52  ;;  %3618 = vmatprep.mubr.msk.f32.mxu1 %vm96_vm0, %v4405_v51 }
  0x65   :  { %3532 = vmatprep.mubr.msk.f32.mxu0 %vm96_vm0, %v4423_v53 }
  0x67   :  { %3619 = vmatmul.mubr.msk.f32.gmra.mxu1 %vm96_vm0, %v4418_v52 }
  0x68   :  { %3533 = vmatmul.mubr.msk.f32.gmra.mxu0 %vm96_vm0, %v4436_v54  ;;  %3621 = vmatprep.mubr.msk.f32.mxu1 %vm96_vm0, %v4423_v53 }
  0x69   :  { %3535 = vmatprep.mubr.msk.f32.mxu0 %vm96_vm0, %v4441_v55 }
  0x6b   :  { %3622 = vmatmul.mubr.msk.f32.gmra.mxu1 %vm96_vm0, %v4436_v54 }
  0x6c   :  { %3536 = vmatmul.mubr.msk.f32.gmra.mxu0 %vm96_vm0, %v4454_v56  ;;  %3624 = vmatprep.mubr.msk.f32.mxu1 %vm96_vm0, %v4441_v55 }
  0x6d   :  { %3538 = vmatprep.mubr.msk.f32.mxu0 %vm96_vm0, %v4459_v57 }
  0x6f   :  { %3625 = vmatmul.mubr.msk.f32.gmra.mxu1 %vm96_vm0, %v4454_v56 }
  0x70   :  { %3539 = vmatmul.mubr.msk.f32.gmra.mxu0 %vm96_vm0, %v4472_v58 }
  0x71   :  { %3543 = vmatprep.mubr.msk.f32.mxu0 %vm96_vm0, %v33_v59 }
  0x74   :  { %3544 = vmatmul.mubr.msk.f32.vlgmr.msra.gmra.mxu0 %vm96_vm0, %v34_v60 }
  0x75   :  { %3628 = vmatpush3.msra.mxu0 %v4075_v14  ;;  %3629 = vmatprep.mubr.msk.f32.mxu0 %vm96_vm0, %v3990_v4 }
  0x78   :  { %3630 = vmatmul.mubr.msk.f32.vlgmr.msra.gmra.mxu0 %vm96_vm0, %v3998_v5  ;;  %v3068_v5 = vld [vmem:[%s5391_s3 + $0x10] sm:$0xff] }
  0x79   :  { %3632 = vmatprep.mubr.msk.f32.mxu0 %vm96_vm0, %v4004_v6  ;;  %3715 = vmatprep.subr.mxu1 %v3068_v5 }
  0x7a   :  { %3716 = vmatpush3.msra.mxu1 %v3068_v5 }
  0x7c   :  { %3633 = vmatmul.mubr.msk.f32.gmra.mxu0 %vm96_vm0, %v4016_v7 }
  0x7d   :  { %3635 = vmatprep.mubr.msk.f32.mxu0 %vm96_vm0, %v4021_v8 }
  0x80   :  { %3636 = vmatmul.mubr.msk.f32.gmra.mxu0 %vm96_vm0, %v4034_v9 }
  0x81   :  { %3638 = vmatprep.mubr.msk.f32.mxu0 %vm96_vm0, %v4039_v10 }
  0x84   :  { %3639 = vmatmul.mubr.msk.f32.gmra.mxu0 %vm96_vm0, %v4052_v11 }
  0x85   :  { %3641 = vmatprep.mubr.msk.f32.mxu0 %vm96_vm0, %v4057_v12 }
  0x88   :  { %3642 = vmatmul.mubr.msk.f32.gmra.mxu0 %vm96_vm0, %v4070_v13 }
  0x89   :  { %3644 = vmatprep.mubr.msk.f32.mxu0 %vm96_vm0, %v4080_v15 }
  0x8c   :  { %3645 = vmatmul.mubr.msk.f32.gmra.mxu0 %vm96_vm0, %v4094_v16 }
  0x8d   :  { %3647 = vmatprep.mubr.msk.f32.mxu0 %vm96_vm0, %v4099_v17 }
  0x90   :  { %3648 = vmatmul.mubr.msk.f32.gmra.mxu0 %vm96_vm0, %v4112_v18 }
  0x91   :  { %3650 = vmatprep.mubr.msk.f32.mxu0 %vm96_vm0, %v4117_v19  ;;  %v91_v19 = vld [vmem:[%s5388_s0 + $0x1d0] sm:$0xff] }
  0x94   :  { %3651 = vmatmul.mubr.msk.f32.gmra.mxu0 %vm96_vm0, %v4130_v20 }
  0x95   :  { %3653 = vmatprep.mubr.msk.f32.mxu0 %vm96_vm0, %v4135_v21  ;;  %v92_v21 = vld [vmem:[%s5388_s0 + $0x1d8] sm:$0xff] }
  0x98   :  { %3654 = vmatmul.mubr.msk.f32.gmra.mxu0 %vm96_vm0, %v4148_v22 }
  0x99   :  { %3656 = vmatprep.mubr.msk.f32.mxu0 %vm96_vm0, %v4153_v23 }
  0x9c   :  { %3657 = vmatmul.mubr.msk.f32.gmra.mxu0 %vm96_vm0, %v4166_v24 }
  0x9d   :  { %3659 = vmatprep.mubr.msk.f32.mxu0 %vm96_vm0, %v4171_v25 }
  0xa0   :  { %3660 = vmatmul.mubr.msk.f32.gmra.mxu0 %vm96_vm0, %v4184_v26 }
  0xa1   :  { %3662 = vmatprep.mubr.msk.f32.mxu0 %vm96_vm0, %v4189_v27 }
  0xa4   :  { %3663 = vmatmul.mubr.msk.f32.gmra.mxu0 %vm96_vm0, %v4202_v28 }
  0xa5   :  { %3665 = vmatprep.mubr.msk.f32.mxu0 %vm96_vm0, %v4207_v29 }
  0xa8   :  { %3666 = vmatmul.mubr.msk.f32.gmra.mxu0 %vm96_vm0, %v4220_v30 }
  0xa9   :  { %3668 = vmatprep.mubr.msk.f32.mxu0 %vm96_vm0, %v4225_v31 }
  0xac   :  { %3669 = vmatmul.mubr.msk.f32.gmra.mxu0 %vm96_vm0, %v4238_v32 }
  0xad   :  { %3671 = vmatprep.mubr.msk.f32.mxu0 %vm96_vm0, %v4243_v33 }
  0xb0   :  { %3672 = vmatmul.mubr.msk.f32.gmra.mxu0 %vm96_vm0, %v4256_v34 }
  0xb1   :  { %3674 = vmatprep.mubr.msk.f32.mxu0 %vm96_vm0, %v4261_v35 }
  0xb4   :  { %3675 = vmatmul.mubr.msk.f32.gmra.mxu0 %vm96_vm0, %v4274_v36 }
  0xb5   :  { %3677 = vmatprep.mubr.msk.f32.mxu0 %vm96_vm0, %v4279_v37 }
  0xb8   :  { %3678 = vmatmul.mubr.msk.f32.gmra.mxu0 %vm96_vm0, %v4292_v38 }
  0xb9   :  { %3680 = vmatprep.mubr.msk.f32.mxu0 %vm96_vm0, %v4297_v39 }
  0xbc   :  { %3681 = vmatmul.mubr.msk.f32.gmra.mxu0 %vm96_vm0, %v4310_v40 }
  0xbd   :  { %3683 = vmatprep.mubr.msk.f32.mxu0 %vm96_vm0, %v4315_v41 }
  0xc0   :  { %3684 = vmatmul.mubr.msk.f32.gmra.mxu0 %vm96_vm0, %v4328_v42 }
  0xc1   :  { %3686 = vmatprep.mubr.msk.f32.mxu0 %vm96_vm0, %v4333_v43 }
  0xc4   :  { %v4568_v62 = vpop.f32.mrf.mxu0  ;;  %3687 = vmatmul.mubr.msk.f32.gmra.mxu0 %vm96_vm0, %v4346_v44 }
  0xc5   :  { %3689 = vmatprep.mubr.msk.f32.mxu0 %vm96_vm0, %v4351_v45 }
  0xc6   :  { %v4574_v63 = vpop.f32.mrf.mxu0 }
  0xc7   :  { %v3548_v0 = vpop.f32.mrf.mxu1 }
  0xc8   :  { %v3462_v1 = vpop.f32.mrf.mxu0  ;;  %3690 = vmatmul.mubr.msk.f32.gmra.mxu0 %vm96_vm0, %v4364_v46 }
  0xc9   :  { %v4578_v2 = vadd.f32 %v3548_v0, %v3462_v1  ;;  %3692 = vmatprep.mubr.msk.f32.mxu0 %vm96_vm0, %v4369_v47  ;;  %v4601_v8 = vpop.f32.mrf.mxu1 }
  0xca   :  { %v4582_v3 = vpop.f32.mrf.mxu0 }
  0xcb   :  { %v4611_v11 = vpop.f32.mrf.mxu1 }
  0xcc   :  { %v4584_v4 = vpop.f32.mrf.mxu0  ;;  %3693 = vmatmul.mubr.msk.f32.gmra.mxu0 %vm96_vm0, %v4382_v48  ;;  %v4702_v48 = vld [vmem:[%s5391_s3 + $0x8] sm:$0xff] }
  0xcd   :  { %3695 = vmatprep.mubr.msk.f32.mxu0 %vm96_vm0, %v4387_v49  ;;  %v4621_v14 = vpop.f32.mrf.mxu1  ;;  %3753 = vmatprep.subr.mxu1 %v4702_v48 }
  0xce   :  { %v4593_v6 = vpop.f32.mrf.mxu0 }
  0xcf   :  { %v4631_v17 = vpop.f32.mrf.mxu1 }
  0xd0   :  { %v4595_v7 = vpop.f32.mrf.mxu0  ;;  %3696 = vmatmul.mubr.msk.f32.gmra.mxu0 %vm96_vm0, %v4400_v50 }
  0xd1   :  { %3698 = vmatprep.mubr.msk.f32.mxu0 %vm96_vm0, %v4405_v51  ;;  %v4646_v22 = vpop.f32.mrf.mxu1 }
  0xd2   :  { %v4603_v9 = vpop.f32.mrf.mxu0 }
  0xd3   :  { %v4653_v25 = vpop.f32.mrf.mxu1 }
  0xd4   :  { %v4605_v10 = vpop.f32.mrf.mxu0  ;;  %3699 = vmatmul.mubr.msk.f32.gmra.mxu0 %vm96_vm0, %v4418_v52 }
  0xd5   :  { %3701 = vmatprep.mubr.msk.f32.mxu0 %vm96_vm0, %v4423_v53  ;;  %v4659_v28 = vpop.f32.mrf.mxu1 }
  0xd6   :  { %v4613_v12 = vpop.f32.mrf.mxu0 }
  0xd7   :  { %v4665_v31 = vpop.f32.mrf.mxu1 }
  0xd8   :  { %v4615_v13 = vpop.f32.mrf.mxu0  ;;  %3702 = vmatmul.mubr.msk.f32.gmra.mxu0 %vm96_vm0, %v4436_v54 }
  0xd9   :  { %3704 = vmatprep.mubr.msk.f32.mxu0 %vm96_vm0, %v4441_v55  ;;  %v4671_v34 = vpop.f32.mrf.mxu1 }
  0xda   :  { %v4623_v15 = vpop.f32.mrf.mxu0 }
  0xdb   :  { %v4677_v37 = vpop.f32.mrf.mxu1 }
  0xdc   :  { %v4625_v16 = vpop.f32.mrf.mxu0  ;;  %3705 = vmatmul.mubr.msk.f32.gmra.mxu0 %vm96_vm0, %v4454_v56 }
  0xdd   :  { %3707 = vmatprep.mubr.msk.f32.mxu0 %vm96_vm0, %v4459_v57  ;;  %v4683_v40 = vpop.f32.mrf.mxu1 }
  0xde   :  { %v4633_v18 = vpop.f32.mrf.mxu0 }
  0xdf   :  { %v4689_v43 = vpop.f32.mrf.mxu1 }
  0xe0   :  { %v4638_v20 = vpop.f32.mrf.mxu0  ;;  %3708 = vmatmul.mubr.msk.f32.gmra.mxu0 %vm96_vm0, %v4472_v58 }
  0xe1   :  { %3710 = vmatprep.mubr.msk.f32.mxu0 %vm96_vm0, %v91_v19  ;;  %v4695_v46 = vpop.f32.mrf.mxu1 }
  0xe2   :  { %v4648_v23 = vpop.f32.mrf.mxu0 }
  0xe3   :  { %v4707_v50 = vpop.f32.mrf.mxu1 }
  0xe4   :  { %v4650_v24 = vpop.f32.mrf.mxu0  ;;  %3711 = vmatmul.mubr.msk.f32.gmra.mxu0 %vm96_vm0, %v92_v21 }
  0xe5   :  { %v4713_v53 = vpop.f32.mrf.mxu1 }
  0xe6   :  { %v4655_v26 = vpop.f32.mrf.mxu0 }
  0xe7   :  { %v4719_v56 = vpop.f32.mrf.mxu1 }
  0xe8   :  { %v4657_v27 = vpop.f32.mrf.mxu0 }
  0xe9   :  { %v4725_v59 = vpop.f32.mrf.mxu1 }
  0xea   :  { %v4661_v29 = vpop.f32.mrf.mxu0 }
  0xeb   :  { %v4731_v0 = vpop.f32.mrf.mxu1 }
  0xec   :  { %v4663_v30 = vpop.f32.mrf.mxu0 }
  0xed   :  { %v4737_v19 = vpop.f32.mrf.mxu1 }
  0xee   :  { %v4667_v32 = vpop.f32.mrf.mxu0 }
  0xf0   :  { %v4669_v33 = vpop.f32.mrf.mxu0 }
  0xf2   :  { %v4673_v35 = vpop.f32.mrf.mxu0 }
  0xf4   :  { %v4675_v36 = vpop.f32.mrf.mxu0 }
  0xf6   :  { %v4679_v38 = vpop.f32.mrf.mxu0 }
  0xf8   :  { %v4681_v39 = vpop.f32.mrf.mxu0 }
  0xfa   :  { %v4685_v41 = vpop.f32.mrf.mxu0 }
  0xfb   :  { %5398 = vst [vmem:[#allocation5_spill] sm:$0xff] %v4685_v41 }
  0xfc   :  { %v4687_v42 = vpop.f32.mrf.mxu0 }
  0xfd   :  { %5399 = vst [vmem:[#allocation6_spill] sm:$0xff] %v4687_v42 }
  0xfe   :  { %v4691_v44 = vpop.f32.mrf.mxu0 }
  0xff   :  { %5400 = vst [vmem:[#allocation7_spill] sm:$0xff] %v4691_v44 }
 0x100   :  { %v4693_v45 = vpop.f32.mrf.mxu0 }
 0x101   :  { %5401 = vst [vmem:[#allocation8_spill] sm:$0xff] %v4693_v45 }
 0x102   :  { %v4697_v47 = vpop.f32.mrf.mxu0 }
 0x103   :  { %5402 = vst [vmem:[#allocation9_spill] sm:$0xff] %v4697_v47 }
 0x104   :  { %v4704_v49 = vpop.f32.mrf.mxu0 }
 0x105   :  { %5403 = vst [vmem:[#allocation10_spill] sm:$0xff] %v4704_v49 }
 0x106   :  { %v4709_v51 = vpop.f32.mrf.mxu0 }
 0x107   :  { %5404 = vst [vmem:[#allocation11_spill] sm:$0xff] %v4709_v51 }
 0x108   :  { %v4711_v52 = vpop.f32.mrf.mxu0 }
 0x109   :  { %5405 = vst [vmem:[#allocation12_spill] sm:$0xff] %v4711_v52 }
 0x10a   :  { %v4715_v54 = vpop.f32.mrf.mxu0 }
 0x10b   :  { %5406 = vst [vmem:[#allocation13_spill] sm:$0xff] %v4715_v54 }
 0x10c   :  { %v4717_v55 = vpop.f32.mrf.mxu0 }
 0x10d   :  { %5407 = vst [vmem:[#allocation14_spill] sm:$0xff] %v4717_v55 }
 0x10e   :  { %v4721_v57 = vpop.f32.mrf.mxu0 }
 0x10f   :  { %5408 = vst [vmem:[#allocation15_spill] sm:$0xff] %v4721_v57  ;;  %v4743_v57 = vpop.f32.mrf.mxu1 }
 0x110   :  { %v4723_v58 = vpop.f32.mrf.mxu0 }
 0x111   :  { %5409 = vst [vmem:[#allocation16_spill] sm:$0xff] %v4723_v58 }
 0x112   :  { %v4727_v60 = vpop.f32.mrf.mxu0 }
 0x113   :  { %5410 = vst [vmem:[#allocation17_spill] sm:$0xff] %v4727_v60  ;;  %v4749_v60 = vpop.f32.mrf.mxu1 }
 0x114   :  { %v4729_v61 = vpop.f32.mrf.mxu0 }
 0x115   :  { %5411 = vst [vmem:[#allocation18_spill] sm:$0xff] %v4729_v61 }
 0x116   :  { %v4733_v1 = vpop.f32.mrf.mxu0 }
 0x117   :  { %5412 = vst [vmem:[#allocation19_spill] sm:$0xff] %v4733_v1  ;;  %v4755_v1 = vpop.f32.mrf.mxu1 }
 0x118   :  { %v4735_v5 = vpop.f32.mrf.mxu0 }
 0x119   :  { %5413 = vst [vmem:[#allocation20_spill] sm:$0xff] %v4735_v5 }
 0x11a   :  { %v4739_v21 = vpop.f32.mrf.mxu0 }
 0x11b   :  { %5414 = vst [vmem:[#allocation21_spill] sm:$0xff] %v4739_v21  ;;  %v4761_v21 = vpop.f32.mrf.mxu1 }
 0x11c   :  { %v4741_v55 = vpop.f32.mrf.mxu0 }
 0x11d   :  { %5415 = vst [vmem:[#allocation22_spill] sm:$0xff] %v4741_v55 }
 0x11e   :  { %v4745_v58 = vpop.f32.mrf.mxu0 }
 0x11f   :  { %5416 = vst [vmem:[#allocation23_spill] sm:$0xff] %v4745_v58  ;;  %v4767_v58 = vpop.f32.mrf.mxu1 }
 0x120   :  { %v4747_v54 = vpop.f32.mrf.mxu0  ;;  %5424 = vst [vmem:[#allocation31_spill] sm:$0xff] %v4767_v58 }
 0x121   :  { %5417 = vst [vmem:[#allocation24_spill] sm:$0xff] %v4747_v54 }
 0x122   :  { %v4751_v61 = vpop.f32.mrf.mxu0 }
 0x123   :  { %5418 = vst [vmem:[#allocation25_spill] sm:$0xff] %v4751_v61  ;;  %v4773_v61 = vpop.f32.mrf.mxu1 }
 0x124   :  { %v4753_v52 = vpop.f32.mrf.mxu0  ;;  %5427 = vst [vmem:[#allocation34_spill] sm:$0xff] %v4773_v61 }
 0x125   :  { %5419 = vst [vmem:[#allocation26_spill] sm:$0xff] %v4753_v52 }
 0x126   :  { %v4757_v5 = vpop.f32.mrf.mxu0 }
 0x127   :  { %5420 = vst [vmem:[#allocation27_spill] sm:$0xff] %v4757_v5  ;;  %v4777_v5 = vpop.f32.mrf.mxu1 }
 0x128   :  { %v4759_v51 = vpop.f32.mrf.mxu0  ;;  %5429 = vst [vmem:[#allocation36_spill] sm:$0xff] %v4777_v5  ;;  %v693_v5 = vadd.f32 %v4601_v8, %v4582_v3 }
 0x129   :  { %5421 = vst [vmem:[#allocation28_spill] sm:$0xff] %v4759_v51  ;;  %v4781_v41 = vpop.f32.mrf.mxu1 }
 0x12a   :  { %v4763_v55 = vpop.f32.mrf.mxu0  ;;  %5430 = vst [vmem:[#allocation37_spill] sm:$0xff] %v4781_v41 }
 0x12b   :  { %5422 = vst [vmem:[#allocation29_spill] sm:$0xff] %v4763_v55 }
 0x12c   :  { %v4765_v49 = vpop.f32.mrf.mxu0 }
 0x12d   :  { %5423 = vst [vmem:[#allocation30_spill] sm:$0xff] %v4765_v49 }
 0x12e   :  { %v4769_v54 = vpop.f32.mrf.mxu0 }
 0x12f   :  { %5425 = vst [vmem:[#allocation32_spill] sm:$0xff] %v4769_v54 }
 0x130   :  { %v4771_v47 = vpop.f32.mrf.mxu0 }
 0x131   :  { %5426 = vst [vmem:[#allocation33_spill] sm:$0xff] %v4771_v47  ;;  %v4786_v47 = vld [vmem:[%s5390_s2] ss:$0 sm:$0xff] }
 0x132   :  { %v4775_v52 = vpop.f32.mrf.mxu0 }
 0x133   :  { %5428 = vst [vmem:[#allocation35_spill] sm:$0xff] %v4775_v52 }
 0x134   :  { %v3545_v45 = vpop.f32.mrf.mxu0 }
 0x135   :  { %v688_v44 = vadd.f32 %v3545_v45, %v4568_v62  ;;  %v4792_v45 = vpop.f32.mrf.mxu1 }
 0x136   :  { %v682_v51 = vpop.f32.mrf.mxu0  ;;  %5431 = vst [vmem:[#allocation38_spill] sm:$0xff] %v4792_v45 }
 0x137   :  { %v683_v55 = vadd.f32 %v682_v51, %v4574_v63  ;;  %v4803_v45 = vpop.f32.mrf.mxu1 }
 0x138   :  { %v3631_v42 = vpop.f32.mrf.mxu0 }
 0x139   :  { %v1315_v49 = vadd.f32 %v3631_v42, %v688_v44  ;;  %v708_v42 = vadd.f32 %v4611_v11, %v4584_v4 }
 0x13a   :  { %v1035_v54 = vpop.f32.mrf.mxu0 }
 0x13b   :  { %v1314_v61 = vadd.f32 %v1035_v54, %v683_v55  ;;  %v1378_v58 = vadd.f32 %v4786_v47, %v1315_v49  ;;  %v703_v54 = vadd.f32 %v4621_v14, %v4593_v6  ;;  %v713_v6 = vadd.f32 %v4646_v22, %v4603_v9 }
 0x13c   :  { %v3634_v52 = vpop.f32.mrf.mxu0 }
 0x13d   :  { %v1317_v62 = vadd.f32 %v3634_v52, %v4578_v2  ;;  %v1377_v44 = vadd.f32 %v4786_v47, %v1314_v61  ;;  %v1434_v3 = vmax.f32 %v1378_v58, 0.0  ;;  %v718_v52 = vadd.f32 %v4631_v17, %v4595_v7 }
 0x13e   :  { %v1045_v63 = vpop.f32.mrf.mxu0  ;;  %v728_v17 = vadd.f32 %v4653_v25, %v4605_v10 }
 0x13f   :  { %v1380_v51 = vadd.f32 %v4786_v47, %v1317_v62  ;;  %v1316_v41 = vadd.f32 %v1045_v63, %v693_v5  ;;  %v1433_v11 = vmax.f32 %v1377_v44, 0.0 }
 0x140   :  { %v3637_v55 = vpop.f32.mrf.mxu0 }
 0x141   :  { %v1436_v8 = vmax.f32 %v1380_v51, 0.0  ;;  %v1379_v49 = vadd.f32 %v4786_v47, %v1316_v41  ;;  %v1319_v2 = vadd.f32 %v3637_v55, %v708_v42  ;;  %v4812_v42 = vpop.f32.mrf.mxu1  ;;  %v723_v55 = vadd.f32 %v4659_v28, %v4613_v12 }
 0x142   :  { %v1055_v4 = vpop.f32.mrf.mxu0  ;;  %v733_v12 = vadd.f32 %v4671_v34, %v4623_v15  ;;  %v1517_v15 = vld [vmem:[%s5391_s3] sm:$0xff]  ;;  %v743_v34 = vadd.f32 %v4683_v40, %v4633_v18 }
 0x143   :  { %v4805_v61 = vmax.f32 %v1434_v3, %v1436_v8  ;;  %v1435_v62 = vmax.f32 %v1379_v49, 0.0  ;;  %v1318_v5 = vadd.f32 %v1055_v4, %v703_v54  ;;  %v1382_v41 = vadd.f32 %v4786_v47, %v1319_v2 }
 0x144   :  { %v3640_v63 = vpop.f32.mrf.mxu0  ;;  %v738_v2 = vadd.f32 %v4665_v31, %v4615_v13  ;;  %v748_v31 = vadd.f32 %v4677_v37, %v4625_v16 }
 0x145   :  { %v4809_v14 = vmax.f32 %v1433_v11, %v1435_v62  ;;  %v1321_v58 = vadd.f32 %v3640_v63, %v718_v52  ;;  %v1381_v44 = vadd.f32 %v4786_v47, %v1318_v5  ;;  %v1438_v22 = vmax.f32 %v1382_v41, 0.0  ;;  %v4823_v52 = vpop.f32.mrf.mxu1 }
 0x146   :  { %v1065_v7 = vpop.f32.mrf.mxu0 }
 0x147   :  { %v1384_v51 = vadd.f32 %v4786_v47, %v1321_v58  ;;  %v1320_v54 = vadd.f32 %v1065_v7, %v713_v6  ;;  %v1437_v25 = vmax.f32 %v1381_v44, 0.0  ;;  %v4832_v41 = vpop.f32.mrf.mxu1 }
 0x148   :  { %v3643_v9 = vpop.f32.mrf.mxu0 }
 0x149   :  { %v1440_v3 = vmax.f32 %v1384_v51, 0.0  ;;  %v1383_v8 = vadd.f32 %v4786_v47, %v1320_v54  ;;  %v1323_v49 = vadd.f32 %v3643_v9, %v728_v17  ;;  %v758_v9 = vadd.f32 %v4689_v43, %v4638_v20  ;;  %v4856_v18 = vpop.f32.mrf.mxu1 }
 0x14a   :  { %v1075_v10 = vpop.f32.mrf.mxu0 }
 0x14b   :  { %v4825_v4 = vmax.f32 %v1438_v22, %v1440_v3  ;;  %v1439_v11 = vmax.f32 %v1383_v8, 0.0  ;;  %v1322_v62 = vadd.f32 %v1075_v10, %v723_v55  ;;  %v1386_v63 = vadd.f32 %v4786_v47, %v1323_v49  ;;  %v4852_v55 = vld [vmem:[%s5391_s3 + $0x28] sm:$0xff] }
 0x14c   :  { %v3646_v5 = vpop.f32.mrf.mxu0 }
 0x14d   :  { %v4829_v28 = vmax.f32 %v1437_v25, %v1439_v11  ;;  %v1325_v6 = vadd.f32 %v3646_v5, %v738_v2  ;;  %v1385_v58 = vadd.f32 %v4786_v47, %v1322_v62  ;;  %v1442_v16 = vmax.f32 %v1386_v63, 0.0  ;;  %v4866_v25 = vpop.f32.mrf.mxu1 }
 0x14e   :  { %v1085_v13 = vpop.f32.mrf.mxu0  ;;  %v768_v62 = vadd.f32 %v4707_v50, %v4650_v24  ;;  %v778_v50 = vadd.f32 %v4719_v56, %v4657_v27  ;;  %v788_v56 = vadd.f32 %v4731_v0, %v4663_v30  ;;  %v798_v0 = vadd.f32 %v4743_v57, %v4669_v33 }
 0x14f   :  { %v1388_v7 = vadd.f32 %v4786_v47, %v1325_v6  ;;  %v1324_v17 = vadd.f32 %v1085_v13, %v733_v12  ;;  %3717 = vmatprep.mubr.msk.f32.mxu1 %vm1522_vm1, %v4829_v28  ;;  %v1441_v22 = vmax.f32 %v1385_v58, 0.0  ;;  %v4881_v58 = vpop.f32.mrf.mxu1  ;;  %v808_v57 = vadd.f32 %v4755_v1, %v4675_v36  ;;  %v5432_v1 = vld [vmem:[#allocation31_spill] sm:$0xff] }
 0x150   :  { %v3649_v44 = vpop.f32.mrf.mxu0  ;;  %3718 = vmatmul.mubr.msk.f32.vlgmr.msra.gmra.mxu1 %vm1522_vm1, %v4825_v4 }
 0x151   :  { %v1444_v37 = vmax.f32 %v1388_v7, 0.0  ;;  %v1387_v51 = vadd.f32 %v4786_v47, %v1324_v17  ;;  %v1327_v54 = vadd.f32 %v3649_v44, %v748_v31  ;;  %3754 = vmatpush3.msra.mxu1 %v4702_v48  ;;  %v753_v48 = vadd.f32 %v4695_v46, %v4648_v23 }
 0x152   :  { %v1095_v40 = vpop.f32.mrf.mxu0  ;;  %3755 = vmatprep.subr.mxu1 %v1517_v15  ;;  %v763_v23 = vadd.f32 %v4713_v53, %v4655_v26  ;;  %v773_v44 = vadd.f32 %v4725_v59, %v4661_v29  ;;  %v783_v29 = vadd.f32 %v4737_v19, %v4667_v32 }
 0x153   :  { %v4858_v3 = vmax.f32 %v1442_v16, %v1444_v37  ;;  %v1443_v8 = vmax.f32 %v1387_v51, 0.0  ;;  %v1326_v49 = vadd.f32 %v1095_v40, %v743_v34  ;;  %3756 = vmatpush3.msra.mxu1 %v1517_v15  ;;  %v1390_v20 = vadd.f32 %v4786_v47, %v1327_v54  ;;  %v4890_v54 = vpop.f32.mrf.mxu1 }
 0x154   :  { %v3652_v2 = vpop.f32.mrf.mxu0  ;;  %3793 = vmatprep.subr.mxu1 %v4852_v55 }
 0x155   :  { %v4863_v10 = vmax.f32 %v1441_v22, %v1443_v8  ;;  %v1329_v43 = vadd.f32 %v3652_v2, %v758_v9  ;;  %v1389_v5 = vadd.f32 %v4786_v47, %v1326_v49  ;;  %v1446_v6 = vmax.f32 %v1390_v20, 0.0 }
 0x156   :  { %v1105_v11 = vpop.f32.mrf.mxu0 }
 0x157   :  { %v1392_v12 = vadd.f32 %v4786_v47, %v1329_v43  ;;  %v1328_v63 = vadd.f32 %v1105_v11, %v753_v48  ;;  %3720 = vmatprep.mubr.msk.f32.mxu1 %vm1522_vm1, %v4863_v10  ;;  %v1445_v17 = vmax.f32 %v1389_v5, 0.0  ;;  %v4905_v48 = vpop.f32.mrf.mxu1  ;;  %v793_v5 = vadd.f32 %v4749_v60, %v4673_v35 }
 0x158   :  { %v3655_v46 = vpop.f32.mrf.mxu0  ;;  %3721 = vmatmul.mubr.msk.f32.gmra.mxu1 %vm1522_vm1, %v4858_v3  ;;  %v803_v35 = vadd.f32 %v4761_v21, %v4679_v38 }
 0x159   :  { %v1448_v13 = vmax.f32 %v1392_v12, 0.0  ;;  %v1391_v31 = vadd.f32 %v4786_v47, %v1328_v63  ;;  %v1331_v24 = vadd.f32 %v3655_v46, %v768_v62  ;;  %v4914_v46 = vpop.f32.mrf.mxu1 }
 0x15a   :  { %v1115_v7 = vpop.f32.mrf.mxu0 }
 0x15b   :  { %v4883_v15 = vmax.f32 %v1446_v6, %v1448_v13  ;;  %v1447_v34 = vmax.f32 %v1391_v31, 0.0  ;;  %v1330_v26 = vadd.f32 %v1115_v7, %v763_v23  ;;  %v1394_v37 = vadd.f32 %v4786_v47, %v1331_v24 }
 0x15c   :  { %v3658_v53 = vpop.f32.mrf.mxu0 }
 0x15d   :  { %v4887_v16 = vmax.f32 %v1445_v17, %v1447_v34  ;;  %v1333_v51 = vadd.f32 %v3658_v53, %v778_v50  ;;  %v1393_v9 = vadd.f32 %v4786_v47, %v1330_v26  ;;  %v1450_v8 = vmax.f32 %v1394_v37, 0.0  ;;  %v4929_v34 = vpop.f32.mrf.mxu1 }
 0x15e   :  { %v1125_v27 = vpop.f32.mrf.mxu0  ;;  %v818_v17 = vadd.f32 %v5432_v1, %v4681_v39 }
 0x15f   :  { %v1396_v40 = vadd.f32 %v4786_v47, %v1333_v51  ;;  %v1332_v22 = vadd.f32 %v1125_v27, %v773_v44  ;;  %3723 = vmatprep.mubr.msk.f32.mxu1 %vm1522_vm1, %v4887_v16  ;;  %v1449_v43 = vmax.f32 %v1393_v9, 0.0  ;;  %v5433_v51 = vld [vmem:[#allocation5_spill] sm:$0xff]  ;;  %v5434_v27 = vld [vmem:[#allocation34_spill] sm:$0xff] }
 0x160   :  { %v3661_v59 = vpop.f32.mrf.mxu0  ;;  %3724 = vmatmul.mubr.msk.f32.gmra.mxu1 %vm1522_vm1, %v4883_v15 }
 0x161   :  { %v1452_v49 = vmax.f32 %v1396_v40, 0.0  ;;  %v1395_v2 = vadd.f32 %v4786_v47, %v1332_v22  ;;  %v1335_v30 = vadd.f32 %v3661_v59, %v788_v56  ;;  %v813_v56 = vadd.f32 %v5434_v27, %v5433_v51  ;;  %v5435_v59 = vld [vmem:[#allocation6_spill] sm:$0xff] }
 0x162   :  { %v1135_v20 = vpop.f32.mrf.mxu0 }
 0x163   :  { %v4907_v11 = vmax.f32 %v1450_v8, %v1452_v49  ;;  %v1451_v62 = vmax.f32 %v1395_v2, 0.0  ;;  %v1334_v32 = vadd.f32 %v1135_v20, %v783_v29  ;;  %v1398_v63 = vadd.f32 %v4786_v47, %v1335_v30  ;;  %v4938_v29 = vpop.f32.mrf.mxu1  ;;  %v5436_v8 = vld [vmem:[#allocation36_spill] sm:$0xff]  ;;  %v5437_v20 = vld [vmem:[#allocation7_spill] sm:$0xff] }
 0x164   :  { %v3664_v19 = vpop.f32.mrf.mxu0  ;;  %v828_v49 = vadd.f32 %v5436_v8, %v5435_v59 }
 0x165   :  { %v4911_v12 = vmax.f32 %v1449_v43, %v1451_v62  ;;  %v1337_v23 = vadd.f32 %v3664_v19, %v798_v0  ;;  %v1397_v6 = vadd.f32 %v4786_v47, %v1334_v32  ;;  %v1454_v24 = vmax.f32 %v1398_v63, 0.0  ;;  %v5438_v43 = vld [vmem:[#allocation37_spill] sm:$0xff] }
 0x166   :  { %v1145_v33 = vpop.f32.mrf.mxu0  ;;  %v823_v62 = vadd.f32 %v5438_v43, %v5437_v20 }
 0x167   :  { %v1400_v13 = vadd.f32 %v4786_v47, %v1337_v23  ;;  %v1336_v31 = vadd.f32 %v1145_v33, %v793_v5  ;;  %3726 = vmatprep.mubr.msk.f32.mxu1 %vm1522_vm1, %v4911_v12  ;;  %v1453_v53 = vmax.f32 %v1397_v6, 0.0  ;;  %v5439_v33 = vld [vmem:[#allocation8_spill] sm:$0xff] }
 0x168   :  { %v3667_v60 = vpop.f32.mrf.mxu0  ;;  %3727 = vmatmul.mubr.msk.f32.gmra.mxu1 %vm1522_vm1, %v4907_v11 }
 0x169   :  { %v1456_v50 = vmax.f32 %v1400_v13, 0.0  ;;  %v1399_v7 = vadd.f32 %v4786_v47, %v1336_v31  ;;  %v1339_v36 = vadd.f32 %v3667_v60, %v808_v57  ;;  %v5440_v57 = vld [vmem:[#allocation38_spill] sm:$0xff]  ;;  %v4953_v13 = vpop.f32.mrf.mxu1 }
 0x16a   :  { %v1155_v26 = vpop.f32.mrf.mxu0  ;;  %v838_v6 = vadd.f32 %v5440_v57, %v5439_v33 }
 0x16b   :  { %v4931_v44 = vmax.f32 %v1454_v24, %v1456_v50  ;;  %v1455_v37 = vmax.f32 %v1399_v7, 0.0  ;;  %v1338_v38 = vadd.f32 %v1155_v26, %v803_v35  ;;  %v1402_v40 = vadd.f32 %v4786_v47, %v1339_v36  ;;  %v5441_v36 = vld [vmem:[#allocation9_spill] sm:$0xff] }
 0x16c   :  { %v3670_v21 = vpop.f32.mrf.mxu0  ;;  %v833_v1 = vadd.f32 %v4803_v45, %v5441_v36  ;;  %v5443_v45 = vld [vmem:[#allocation11_spill] sm:$0xff] }
 0x16d   :  { %v4935_v9 = vmax.f32 %v1453_v53, %v1455_v37  ;;  %v1341_v22 = vadd.f32 %v3670_v21, %v818_v17  ;;  %v1401_v2 = vadd.f32 %v4786_v47, %v1338_v38  ;;  %v1458_v19 = vmax.f32 %v1402_v40, 0.0  ;;  %v4962_v37 = vpop.f32.mrf.mxu1  ;;  %v5442_v21 = vld [vmem:[#allocation10_spill] sm:$0xff] }
 0x16e   :  { %v1165_v39 = vpop.f32.mrf.mxu0  ;;  %v848_v51 = vadd.f32 %v4812_v42, %v5442_v21  ;;  %v5448_v21 = vld [vmem:[#allocation16_spill] sm:$0xff] }
 0x16f   :  { %v1404_v30 = vadd.f32 %v4786_v47, %v1341_v22  ;;  %v1340_v0 = vadd.f32 %v1165_v39, %v813_v56  ;;  %3729 = vmatprep.mubr.msk.f32.mxu1 %vm1522_vm1, %v4935_v9  ;;  %v1457_v35 = vmax.f32 %v1401_v2, 0.0  ;;  %v843_v22 = vadd.f32 %v4823_v52, %v5443_v45  ;;  %v5444_v2 = vld [vmem:[#allocation12_spill] sm:$0xff] }
 0x170   :  { %v3673_v32 = vpop.f32.mrf.mxu0  ;;  %3730 = vmatmul.mubr.msk.f32.gmra.mxu1 %vm1522_vm1, %v4931_v44 }
 0x171   :  { %v1460_v5 = vmax.f32 %v1404_v30, 0.0  ;;  %v1403_v63 = vadd.f32 %v4786_v47, %v1340_v0  ;;  %v1343_v23 = vadd.f32 %v3673_v32, %v828_v49  ;;  %v858_v30 = vadd.f32 %v4832_v41, %v5444_v2  ;;  %v4977_v0 = vpop.f32.mrf.mxu1 }
 0x172   :  { %v1175_v31 = vpop.f32.mrf.mxu0 }
 0x173   :  { %v4955_v60 = vmax.f32 %v1458_v19, %v1460_v5  ;;  %v1459_v24 = vmax.f32 %v1403_v63, 0.0  ;;  %v1342_v50 = vadd.f32 %v1175_v31, %v823_v62  ;;  %v1406_v26 = vadd.f32 %v4786_v47, %v1343_v23  ;;  %v5445_v5 = vld [vmem:[#allocation13_spill] sm:$0xff]  ;;  %v5446_v31 = vld [vmem:[#allocation14_spill] sm:$0xff] }
 0x174   :  { %v3676_v7 = vpop.f32.mrf.mxu0  ;;  %v853_v63 = vadd.f32 %v4856_v18, %v5445_v5  ;;  %v5447_v18 = vld [vmem:[#allocation15_spill] sm:$0xff] }
 0x175   :  { %v4959_v17 = vmax.f32 %v1457_v35, %v1459_v24  ;;  %v1345_v53 = vadd.f32 %v3676_v7, %v838_v6  ;;  %v1405_v27 = vadd.f32 %v4786_v47, %v1342_v50  ;;  %v1462_v59 = vmax.f32 %v1406_v26, 0.0  ;;  %v4986_v6 = vpop.f32.mrf.mxu1  ;;  %v5451_v5 = vld [vmem:[#allocation19_spill] sm:$0xff] }
 0x176   :  { %v1185_v38 = vpop.f32.mrf.mxu0  ;;  %v868_v35 = vadd.f32 %v4866_v25, %v5446_v31  ;;  %v863_v36 = vadd.f32 %v4881_v58, %v5447_v18  ;;  %v5452_v31 = vld [vmem:[#allocation20_spill] sm:$0xff] }
 0x177   :  { %v1408_v56 = vadd.f32 %v4786_v47, %v1345_v53  ;;  %v1344_v40 = vadd.f32 %v1185_v38, %v833_v1  ;;  %3732 = vmatprep.mubr.msk.f32.mxu1 %vm1522_vm1, %v4959_v17  ;;  %v1461_v43 = vmax.f32 %v1405_v27, 0.0  ;;  %v912_v27 = vpop.f32.mrf.mxu1 }
 0x178   :  { %v3679_v39 = vpop.f32.mrf.mxu0  ;;  %3733 = vmatmul.mubr.msk.f32.gmra.mxu1 %vm1522_vm1, %v4955_v60 }
 0x179   :  { %v1464_v8 = vmax.f32 %v1408_v56, 0.0  ;;  %v1407_v49 = vadd.f32 %v4786_v47, %v1344_v40  ;;  %v1347_v42 = vadd.f32 %v3679_v39, %v848_v51  ;;  %v878_v51 = vadd.f32 %v4890_v54, %v5448_v21 }
 0x17a   :  { %v1195_v20 = vpop.f32.mrf.mxu0 }
 0x17b   :  { %v4979_v62 = vmax.f32 %v1462_v59, %v1464_v8  ;;  %v1463_v32 = vmax.f32 %v1407_v49, 0.0  ;;  %v1346_v52 = vadd.f32 %v1195_v20, %v843_v22  ;;  %v1410_v33 = vadd.f32 %v4786_v47, %v1347_v42  ;;  %v5449_v59 = vld [vmem:[#allocation17_spill] sm:$0xff] }
 0x17c   :  { %v3682_v19 = vpop.f32.mrf.mxu0  ;;  %v873_v8 = vadd.f32 %v4905_v48, %v5449_v59  ;;  %v883_v48 = vadd.f32 %v4929_v34, %v5451_v5  ;;  %v5455_v59 = vld [vmem:[#allocation23_spill] sm:$0xff] }
 0x17d   :  { %v4983_v23 = vmax.f32 %v1461_v43, %v1463_v32  ;;  %v1349_v57 = vadd.f32 %v3682_v19, %v858_v30  ;;  %v1409_v24 = vadd.f32 %v4786_v47, %v1346_v52  ;;  %v1466_v26 = vmax.f32 %v1410_v33, 0.0  ;;  %v3617_v30 = vpop.f32.mrf.mxu1  ;;  %v5450_v43 = vld [vmem:[#allocation18_spill] sm:$0xff] }
 0x17e   :  { %v1205_v41 = vpop.f32.mrf.mxu0  ;;  %v888_v54 = vadd.f32 %v4914_v46, %v5450_v43  ;;  %v5456_v43 = vld [vmem:[#allocation24_spill] sm:$0xff] }
 0x17f   :  { %v1412_v50 = vadd.f32 %v4786_v47, %v1349_v57  ;;  %v1348_v7 = vadd.f32 %v1205_v41, %v853_v63  ;;  %3735 = vmatprep.mubr.msk.f32.mxu1 %vm1522_vm1, %v4983_v23  ;;  %v1465_v40 = vmax.f32 %v1409_v24, 0.0  ;;  %v922_v24 = vpop.f32.mrf.mxu1 }
 0x180   :  { %v3685_v1 = vpop.f32.mrf.mxu0  ;;  %3736 = vmatmul.mubr.msk.f32.gmra.mxu1 %vm1522_vm1, %v4979_v62 }
 0x181   :  { %v1468_v53 = vmax.f32 %v1412_v50, 0.0  ;;  %v1411_v38 = vadd.f32 %v4786_v47, %v1348_v7  ;;  %v1351_v25 = vadd.f32 %v3685_v1, %v868_v35  ;;  %v898_v35 = vadd.f32 %v4938_v29, %v5452_v31 }
 0x182   :  { %v1215_v56 = vpop.f32.mrf.mxu0 }
 0x183   :  { %v5001_v45 = vmax.f32 %v1466_v26, %v1468_v53  ;;  %v1467_v22 = vmax.f32 %v1411_v38, 0.0  ;;  %v1350_v39 = vadd.f32 %v1215_v56, %v863_v36  ;;  %v1414_v42 = vadd.f32 %v4786_v47, %v1351_v25  ;;  %v5453_v26 = vld [vmem:[#allocation21_spill] sm:$0xff] }
 0x184   :  { %v3688_v58 = vpop.f32.mrf.mxu0  ;;  %v893_v53 = vadd.f32 %v4953_v13, %v5453_v26  ;;  %v903_v13 = vadd.f32 %v4977_v0, %v5455_v59  ;;  %v5459_v26 = vld [vmem:[#allocation27_spill] sm:$0xff] }
 0x185   :  { %v5005_v49 = vmax.f32 %v1465_v40, %v1467_v22  ;;  %v1353_v2 = vadd.f32 %v3688_v58, %v878_v51  ;;  %v1413_v32 = vadd.f32 %v4786_v47, %v1350_v39  ;;  %v1470_v33 = vmax.f32 %v1414_v42, 0.0  ;;  %v3620_v51 = vpop.f32.mrf.mxu1  ;;  %v5454_v40 = vld [vmem:[#allocation22_spill] sm:$0xff] }
 0x186   :  { %v1225_v20 = vpop.f32.mrf.mxu0  ;;  %v908_v29 = vadd.f32 %v4962_v37, %v5454_v40 }
 0x187   :  { %v1416_v52 = vadd.f32 %v4786_v47, %v1353_v2  ;;  %v1352_v19 = vadd.f32 %v1225_v20, %v873_v8  ;;  %3738 = vmatprep.mubr.msk.f32.mxu1 %vm1522_vm1, %v5005_v49  ;;  %v1469_v7 = vmax.f32 %v1413_v32, 0.0  ;;  %v932_v32 = vpop.f32.mrf.mxu1 }
 0x188   :  { %v3691_v63 = vpop.f32.mrf.mxu0  ;;  %3739 = vmatmul.mubr.msk.f32.gmra.mxu1 %vm1522_vm1, %v5001_v45 }
 0x189   :  { %v1472_v57 = vmax.f32 %v1416_v52, 0.0  ;;  %v1415_v41 = vadd.f32 %v4786_v47, %v1352_v19  ;;  %v1355_v46 = vadd.f32 %v3691_v63, %v888_v54  ;;  %v918_v54 = vadd.f32 %v4986_v6, %v5456_v43 }
 0x18a   :  { %v1235_v50 = vpop.f32.mrf.mxu0 }
 0x18b   :  { %v5021_v18 = vmax.f32 %v1470_v33, %v1472_v57  ;;  %v1471_v36 = vmax.f32 %v1415_v41, 0.0  ;;  %v1354_v1 = vadd.f32 %v1235_v50, %v883_v48  ;;  %v1418_v25 = vadd.f32 %v4786_v47, %v1355_v46  ;;  %v5457_v33 = vld [vmem:[#allocation25_spill] sm:$0xff] }
 0x18c   :  { %v3694_v34 = vpop.f32.mrf.mxu0  ;;  %v913_v57 = vadd.f32 %v912_v27, %v5457_v33  ;;  %v5463_v33 = vld [vmem:[#allocation32_spill] sm:$0xff] }
 0x18d   :  { %v5025_v38 = vmax.f32 %v1469_v7, %v1471_v36  ;;  %v1357_v21 = vadd.f32 %v3694_v34, %v898_v35  ;;  %v1417_v22 = vadd.f32 %v4786_v47, %v1354_v1  ;;  %v1474_v42 = vmax.f32 %v1418_v25, 0.0  ;;  %v3623_v35 = vpop.f32.mrf.mxu1  ;;  %v5458_v7 = vld [vmem:[#allocation26_spill] sm:$0xff] }
 0x18e   :  { %v1245_v56 = vpop.f32.mrf.mxu0  ;;  %v928_v36 = vadd.f32 %v3617_v30, %v5458_v7  ;;  %v5460_v30 = vld [vmem:[#allocation28_spill] sm:$0xff] }
 0x18f   :  { %v1420_v39 = vadd.f32 %v4786_v47, %v1357_v21  ;;  %v1356_v58 = vadd.f32 %v1245_v56, %v893_v53  ;;  %3741 = vmatprep.mubr.msk.f32.mxu1 %vm1522_vm1, %v5025_v38  ;;  %v1473_v19 = vmax.f32 %v1417_v22, 0.0  ;;  %v923_v53 = vadd.f32 %v922_v24, %v5459_v26  ;;  %v942_v22 = vpop.f32.mrf.mxu1  ;;  %v5461_v24 = vld [vmem:[#allocation29_spill] sm:$0xff] }
 0x190   :  { %v3697_v8 = vpop.f32.mrf.mxu0  ;;  %3742 = vmatmul.mubr.msk.f32.gmra.mxu1 %vm1522_vm1, %v5021_v18 }
 0x191   :  { %v1476_v2 = vmax.f32 %v1420_v39, 0.0  ;;  %v1419_v20 = vadd.f32 %v4786_v47, %v1356_v58  ;;  %v1359_v37 = vadd.f32 %v3697_v8, %v908_v29  ;;  %v938_v29 = vadd.f32 %v3620_v51, %v5460_v30 }
 0x192   :  { %v1255_v52 = vpop.f32.mrf.mxu0 }
 0x193   :  { %v5041_v5 = vmax.f32 %v1474_v42, %v1476_v2  ;;  %v1475_v48 = vmax.f32 %v1419_v20, 0.0  ;;  %v1358_v63 = vadd.f32 %v1255_v52, %v903_v13  ;;  %v1422_v46 = vadd.f32 %v4786_v47, %v1359_v37 }
 0x194   :  { %v3700_v0 = vpop.f32.mrf.mxu0  ;;  %v933_v2 = vadd.f32 %v932_v32, %v5461_v24 }
 0x195   :  { %v5044_v41 = vmax.f32 %v1473_v19, %v1475_v48  ;;  %v1361_v31 = vadd.f32 %v3700_v0, %v918_v54  ;;  %v1421_v6 = vadd.f32 %v4786_v47, %v1358_v63  ;;  %v1478_v25 = vmax.f32 %v1422_v46, 0.0  ;;  %v3626_v54 = vpop.f32.mrf.mxu1  ;;  %v5462_v19 = vld [vmem:[#allocation30_spill] sm:$0xff] }
 0x196   :  { %v1265_v50 = vpop.f32.mrf.mxu0  ;;  %v948_v48 = vadd.f32 %v3623_v35, %v5462_v19  ;;  %v5464_v35 = vld [vmem:[#allocation33_spill] sm:$0xff] }
 0x197   :  { %v1424_v1 = vadd.f32 %v4786_v47, %v1361_v31  ;;  %v1360_v34 = vadd.f32 %v1265_v50, %v913_v57  ;;  %3744 = vmatprep.mubr.msk.f32.mxu1 %vm1522_vm1, %v5044_v41  ;;  %v1477_v58 = vmax.f32 %v1421_v6, 0.0  ;;  %v943_v57 = vadd.f32 %v942_v22, %v5463_v33  ;;  %v952_v6 = vpop.f32.mrf.mxu1 }
 0x198   :  { %v3703_v27 = vpop.f32.mrf.mxu0  ;;  %3745 = vmatmul.mubr.msk.f32.gmra.mxu1 %vm1522_vm1, %v5041_v5 }
 0x199   :  { %v1480_v21 = vmax.f32 %v1424_v1, 0.0  ;;  %v1423_v56 = vadd.f32 %v4786_v47, %v1360_v34  ;;  %v1363_v40 = vadd.f32 %v3703_v27, %v928_v36  ;;  %v958_v36 = vadd.f32 %v3626_v54, %v5464_v35  ;;  %v3118_v54 = vld [vmem:[%s5391_s3 + $0x20] sm:$0xff] }
 0x19a   :  { %v1275_v39 = vpop.f32.mrf.mxu0 }
 0x19b   :  { %v5057_v59 = vmax.f32 %v1478_v25, %v1480_v21  ;;  %v1479_v13 = vmax.f32 %v1423_v56, 0.0  ;;  %v1362_v8 = vadd.f32 %v1275_v39, %v923_v53  ;;  %v1426_v37 = vadd.f32 %v4786_v47, %v1363_v40  ;;  %v5465_v21 = vld [vmem:[#allocation35_spill] sm:$0xff] }
 0x19c   :  { %v3706_v42 = vpop.f32.mrf.mxu0  ;;  %v953_v56 = vadd.f32 %v952_v6, %v5465_v21 }
 0x19d   :  { %v5060_v20 = vmax.f32 %v1477_v58, %v1479_v13  ;;  %v1365_v43 = vadd.f32 %v3706_v42, %v938_v29  ;;  %v1425_v51 = vadd.f32 %v4786_v47, %v1362_v8  ;;  %v1482_v46 = vmax.f32 %v1426_v37, 0.0 }
 0x19e   :  { %v1285_v52 = vpop.f32.mrf.mxu0 }
 0x19f   :  { %v1428_v63 = vadd.f32 %v4786_v47, %v1365_v43  ;;  %v1364_v0 = vadd.f32 %v1285_v52, %v933_v2  ;;  %3747 = vmatprep.mubr.msk.f32.mxu1 %vm1522_vm1, %v5060_v20  ;;  %v1481_v34 = vmax.f32 %v1425_v51, 0.0 }
 0x1a0   :  { %v3709_v32 = vpop.f32.mrf.mxu0  ;;  %3748 = vmatmul.mubr.msk.f32.gmra.mxu1 %vm1522_vm1, %v5057_v59 }
 0x1a1   :  { %v1484_v31 = vmax.f32 %v1428_v63, 0.0  ;;  %v1427_v50 = vadd.f32 %v4786_v47, %v1364_v0  ;;  %v1367_v7 = vadd.f32 %v3709_v32, %v948_v48 }
 0x1a2   :  { %v1295_v1 = vpop.f32.mrf.mxu0 }
 0x1a3   :  { %v5073_v26 = vmax.f32 %v1482_v46, %v1484_v31  ;;  %v1483_v53 = vmax.f32 %v1427_v50, 0.0  ;;  %v1366_v27 = vadd.f32 %v1295_v1, %v943_v57  ;;  %v1430_v30 = vadd.f32 %v4786_v47, %v1367_v7 }
 0x1a4   :  { %v3712_v25 = vpop.f32.mrf.mxu0 }
 0x1a5   :  { %v5076_v40 = vmax.f32 %v1481_v34, %v1483_v53  ;;  %v1369_v29 = vadd.f32 %v3712_v25, %v958_v36  ;;  %v1429_v39 = vadd.f32 %v4786_v47, %v1366_v27  ;;  %v1486_v8 = vmax.f32 %v1430_v30, 0.0 }
 0x1a6   :  { %v1305_v22 = vpop.f32.mrf.mxu0 }
 0x1a7   :  { %v1432_v58 = vadd.f32 %v4786_v47, %v1369_v29  ;;  %v1368_v13 = vadd.f32 %v1305_v22, %v953_v56  ;;  %3750 = vmatprep.mubr.msk.f32.mxu1 %vm1522_vm1, %v5076_v40  ;;  %v1485_v2 = vmax.f32 %v1429_v39, 0.0 }
 0x1a8   :  { %3751 = vmatmul.mubr.msk.f32.gmra.mxu1 %vm1522_vm1, %v5073_v26 }
 0x1a9   :  { %v1488_v42 = vmax.f32 %v1432_v58, 0.0  ;;  %v1431_v24 = vadd.f32 %v4786_v47, %v1368_v13  ;;  %3757 = vmatprep.mubr.msk.f32.mxu1 %vm1522_vm1, %v4809_v14  ;;  %v3146_v47 = vld [vmem:[%s5393_s5 + $0x18] sm:$0xff] }
 0x1aa   :  { %3833 = vmatprep.subr.mxu0 %v3146_v47 }
 0x1ab   :  { %v1516_v37 = vmax.f32 %v1486_v8, %v1488_v42  ;;  %v1487_v43 = vmax.f32 %v1431_v24, 0.0  ;;  %3834 = vmatpush3.msra.mxu0 %v3146_v47 }
 0x1ac   :  { %3758 = vmatmul.mubr.msk.f32.vlgmr.msra.gmra.mxu1 %vm1522_vm1, %v4805_v61  ;;  %v3145_v61 = vld [vmem:[%s5393_s5 + $0x10] sm:$0xff] }
 0x1ad   :  { %v1515_v52 = vmax.f32 %v1485_v2, %v1487_v43  ;;  %3760 = vmatprep.mubr.msk.f32.mxu1 %vm1522_vm1, %v4829_v28  ;;  %3794 = vmatpush3.msra.mxu1 %v4852_v55 }
 0x1ae   :  { %3795 = vmatprep.subr.mxu1 %v3118_v54  ;;  %3835 = vmatprep.subr.mxu0 %v3145_v61 }
 0x1af   :  { %3796 = vmatpush3.msra.mxu1 %v3118_v54  ;;  %3836 = vmatpush3.msra.mxu0 %v3145_v61 }
 0x1b0   :  { %3761 = vmatmul.mubr.msk.f32.gmra.mxu1 %vm1522_vm1, %v4825_v4 }
 0x1b1   :  { %3763 = vmatprep.mubr.msk.f32.mxu1 %vm1522_vm1, %v4863_v10 }
 0x1b4   :  { %3764 = vmatmul.mubr.msk.f32.gmra.mxu1 %vm1522_vm1, %v4858_v3 }
 0x1b5   :  { %3766 = vmatprep.mubr.msk.f32.mxu1 %vm1522_vm1, %v4887_v16 }
 0x1b8   :  { %3767 = vmatmul.mubr.msk.f32.gmra.mxu1 %vm1522_vm1, %v4883_v15 }
 0x1b9   :  { %3769 = vmatprep.mubr.msk.f32.mxu1 %vm1522_vm1, %v4911_v12 }
 0x1bc   :  { %3770 = vmatmul.mubr.msk.f32.gmra.mxu1 %vm1522_vm1, %v4907_v11 }
 0x1bd   :  { %3772 = vmatprep.mubr.msk.f32.mxu1 %vm1522_vm1, %v4935_v9 }
 0x1c0   :  { %3773 = vmatmul.mubr.msk.f32.gmra.mxu1 %vm1522_vm1, %v4931_v44 }
 0x1c1   :  { %3775 = vmatprep.mubr.msk.f32.mxu1 %vm1522_vm1, %v4959_v17 }
 0x1c4   :  { %3776 = vmatmul.mubr.msk.f32.gmra.mxu1 %vm1522_vm1, %v4955_v60 }
 0x1c5   :  { %3778 = vmatprep.mubr.msk.f32.mxu1 %vm1522_vm1, %v4983_v23 }
 0x1c8   :  { %3779 = vmatmul.mubr.msk.f32.gmra.mxu1 %vm1522_vm1, %v4979_v62 }
 0x1c9   :  { %3781 = vmatprep.mubr.msk.f32.mxu1 %vm1522_vm1, %v5005_v49 }
 0x1cc   :  { %3782 = vmatmul.mubr.msk.f32.gmra.mxu1 %vm1522_vm1, %v5001_v45 }
 0x1cd   :  { %3784 = vmatprep.mubr.msk.f32.mxu1 %vm1522_vm1, %v5025_v38 }
 0x1d0   :  { %3785 = vmatmul.mubr.msk.f32.gmra.mxu1 %vm1522_vm1, %v5021_v18 }
 0x1d1   :  { %3787 = vmatprep.mubr.msk.f32.mxu1 %vm1522_vm1, %v5044_v41 }
 0x1d4   :  { %3788 = vmatmul.mubr.msk.f32.gmra.mxu1 %vm1522_vm1, %v5041_v5 }
 0x1d5   :  { %3790 = vmatprep.mubr.msk.f32.mxu1 %vm1522_vm1, %v5060_v20 }
 0x1d8   :  { %3791 = vmatmul.mubr.msk.f32.gmra.mxu1 %vm1522_vm1, %v5057_v59 }
 0x1d9   :  { %3797 = vmatprep.mubr.msk.f32.mxu1 %vm1522_vm1, %v4863_v10  ;;  %v5197_v10 = vld [vmem:[%s5393_s5 + $0x8] sm:$0xff] }
 0x1da   :  { %3840 = vmatprep.subr.mxu0 %v5197_v10 }
 0x1dc   :  { %3798 = vmatmul.mubr.msk.f32.vlgmr.msra.gmra.mxu1 %vm1522_vm1, %v4858_v3 }
 0x1dd   :  { %3800 = vmatprep.mubr.msk.f32.mxu1 %vm1522_vm1, %v4887_v16 }
 0x1e0   :  { %3801 = vmatmul.mubr.msk.f32.gmra.mxu1 %vm1522_vm1, %v4883_v15 }
 0x1e1   :  { %3803 = vmatprep.mubr.msk.f32.mxu1 %vm1522_vm1, %v4911_v12 }
 0x1e4   :  { %3804 = vmatmul.mubr.msk.f32.gmra.mxu1 %vm1522_vm1, %v4907_v11 }
 0x1e5   :  { %3806 = vmatprep.mubr.msk.f32.mxu1 %vm1522_vm1, %v4935_v9 }
 0x1e8   :  { %3807 = vmatmul.mubr.msk.f32.gmra.mxu1 %vm1522_vm1, %v4931_v44 }
 0x1e9   :  { %3809 = vmatprep.mubr.msk.f32.mxu1 %vm1522_vm1, %v4959_v17 }
 0x1ec   :  { %3810 = vmatmul.mubr.msk.f32.gmra.mxu1 %vm1522_vm1, %v4955_v60 }
 0x1ed   :  { %3812 = vmatprep.mubr.msk.f32.mxu1 %vm1522_vm1, %v4983_v23 }
 0x1f0   :  { %3813 = vmatmul.mubr.msk.f32.gmra.mxu1 %vm1522_vm1, %v4979_v62 }
 0x1f1   :  { %3815 = vmatprep.mubr.msk.f32.mxu1 %vm1522_vm1, %v5005_v49  ;;  %v2785_v49 = vld [vmem:[%s5395_s7 + $0x38] sm:$0xf] }
 0x1f2   :  { %3875 = vmatprep.subr.msk.mxu1 %vm2800_vm2, %v2785_v49 }
 0x1f3   :  { %3876 = vmatpush3.msk.msra.mxu1 %vm2800_vm2, %v2785_v49 }
 0x1f4   :  { %3816 = vmatmul.mubr.msk.f32.gmra.mxu1 %vm1522_vm1, %v5001_v45 }
 0x1f5   :  { %3818 = vmatprep.mubr.msk.f32.mxu1 %vm1522_vm1, %v5025_v38 }
 0x1f8   :  { %3819 = vmatmul.mubr.msk.f32.gmra.mxu1 %vm1522_vm1, %v5021_v18 }
 0x1f9   :  { %3821 = vmatprep.mubr.msk.f32.mxu1 %vm1522_vm1, %v5044_v41 }
 0x1fc   :  { %3822 = vmatmul.mubr.msk.f32.gmra.mxu1 %vm1522_vm1, %v5041_v5 }
 0x1fd   :  { %3824 = vmatprep.mubr.msk.f32.mxu1 %vm1522_vm1, %v5060_v20 }
 0x200   :  { %3825 = vmatmul.mubr.msk.f32.gmra.mxu1 %vm1522_vm1, %v5057_v59 }
 0x201   :  { %3827 = vmatprep.mubr.msk.f32.mxu1 %vm1522_vm1, %v5076_v40 }
 0x204   :  { %3828 = vmatmul.mubr.msk.f32.gmra.mxu1 %vm1522_vm1, %v5073_v26 }
 0x205   :  { %3830 = vmatprep.mubr.msk.f32.mxu1 %vm1522_vm1, %v1515_v52 }
 0x208   :  { %3831 = vmatmul.mubr.msk.f32.gmra.mxu1 %vm1522_vm1, %v1516_v37 }
 0x210   :  { %v5190_v14 = vpop.f32.mrf.mxu1 }
 0x212   :  { %v1661_v4 = vpop.f32.mrf.mxu1 }
 0x218   :  { %v5192_v28 = vpop.f32.mrf.mxu1 }
 0x21a   :  { %v1671_v55 = vpop.f32.mrf.mxu1 }
 0x220   :  { %v3725_v3 = vpop.f32.mrf.mxu1 }
 0x222   :  { %v1681_v15 = vpop.f32.mrf.mxu1 }
 0x228   :  { %v3728_v16 = vpop.f32.mrf.mxu1 }
 0x22a   :  { %v1691_v11 = vpop.f32.mrf.mxu1 }
 0x230   :  { %v5200_v12 = vpop.f32.mrf.mxu1 }
 0x232   :  { %v5202_v44 = vpop.f32.mrf.mxu1 }
 0x238   :  { %v5204_v9 = vpop.f32.mrf.mxu1 }
 0x23a   :  { %v5206_v60 = vpop.f32.mrf.mxu1 }
 0x240   :  { %v5208_v17 = vpop.f32.mrf.mxu1 }
 0x242   :  { %v5210_v62 = vpop.f32.mrf.mxu1 }
 0x248   :  { %v5212_v23 = vpop.f32.mrf.mxu1 }
 0x24a   :  { %v5214_v45 = vpop.f32.mrf.mxu1 }
 0x250   :  { %v5219_v18 = vpop.f32.mrf.mxu1 }
 0x252   :  { %v5221_v38 = vpop.f32.mrf.mxu1 }
 0x258   :  { %v5223_v5 = vpop.f32.mrf.mxu1 }
 0x25a   :  { %v5225_v41 = vpop.f32.mrf.mxu1 }
 0x260   :  { %v5227_v59 = vpop.f32.mrf.mxu1 }
 0x262   :  { %v5229_v20 = vpop.f32.mrf.mxu1 }
 0x268   :  { %v5231_v19 = vpop.f32.mrf.mxu1 }
 0x269   :  { %5466 = vst [vmem:[#allocation31_spill] sm:$0xff] %v5231_v19 }
 0x26a   :  { %v5233_v48 = vpop.f32.mrf.mxu1 }
 0x26b   :  { %5467 = vst [vmem:[#allocation5_spill] sm:$0xff] %v5233_v48 }
 0x26c   :  { %v3759_v51 = vpop.f32.mrf.mxu1 }
 0x26e   :  { %v1852_v63 = vpop.f32.mrf.mxu1 }
 0x26f   :  { %v1853_v43 = vadd.f32 %v1852_v63, %v1661_v4 }
 0x270   :  { %v3762_v0 = vpop.f32.mrf.mxu1 }
 0x271   :  { %v1868_v61 = vadd.f32 %v3762_v0, %v5192_v28 }
 0x272   :  { %v1862_v33 = vpop.f32.mrf.mxu1 }
 0x273   :  { %v1863_v42 = vadd.f32 %v1862_v33, %v1671_v55  ;;  %v5264_v55 = vld [vmem:[%s5392_s4] ss:$0 sm:$0xff] }
 0x274   :  { %v3765_v57 = vpop.f32.mrf.mxu1 }
 0x275   :  { %v1878_v2 = vadd.f32 %v3765_v57, %v3725_v3 }
 0x276   :  { %v1872_v32 = vpop.f32.mrf.mxu1 }
 0x277   :  { %v1873_v24 = vadd.f32 %v1872_v32, %v1681_v15 }
 0x278   :  { %v3768_v46 = vpop.f32.mrf.mxu1 }
 0x279   :  { %v1888_v54 = vadd.f32 %v3768_v46, %v3728_v16 }
 0x27a   :  { %v1882_v31 = vpop.f32.mrf.mxu1 }
 0x27c   :  { %v3771_v50 = vpop.f32.mrf.mxu1 }
 0x27d   :  { %v1898_v57 = vadd.f32 %v3771_v50, %v5200_v12 }
 0x27e   :  { %v1892_v7 = vpop.f32.mrf.mxu1 }
 0x280   :  { %v3774_v35 = vpop.f32.mrf.mxu1 }
 0x281   :  { %v1908_v32 = vadd.f32 %v3774_v35, %v5204_v9 }
 0x282   :  { %v1902_v36 = vpop.f32.mrf.mxu1 }
 0x284   :  { %v5235_v6 = vpop.f32.mrf.mxu1 }
 0x286   :  { %v5237_v1 = vpop.f32.mrf.mxu1 }
 0x288   :  { %v5239_v34 = vpop.f32.mrf.mxu1 }
 0x28a   :  { %v5241_v26 = vpop.f32.mrf.mxu1 }
 0x28c   :  { %v5243_v53 = vpop.f32.mrf.mxu1 }
 0x28e   :  { %v5245_v27 = vpop.f32.mrf.mxu1 }
 0x290   :  { %v5247_v25 = vpop.f32.mrf.mxu1 }
 0x292   :  { %v5249_v21 = vpop.f32.mrf.mxu1 }
 0x294   :  { %v5251_v56 = vpop.f32.mrf.mxu1 }
 0x296   :  { %v5253_v40 = vpop.f32.mrf.mxu1 }
 0x297   :  { %5468 = vst [vmem:[#allocation34_spill] sm:$0xff] %v5253_v40  ;;  %v1858_v40 = vadd.f32 %v3759_v51, %v5190_v14  ;;  %v1893_v14 = vadd.f32 %v1892_v7, %v5202_v44 }
 0x298   :  { %v5255_v30 = vpop.f32.mrf.mxu1 }
 0x299   :  { %5469 = vst [vmem:[#allocation6_spill] sm:$0xff] %v5255_v30  ;;  %v1883_v30 = vadd.f32 %v1882_v31, %v1691_v11 }
 0x29a   :  { %v5257_v29 = vpop.f32.mrf.mxu1 }
 0x29b   :  { %5470 = vst [vmem:[#allocation36_spill] sm:$0xff] %v5257_v29 }
 0x29c   :  { %v3799_v22 = vpop.f32.mrf.mxu1 }
 0x29d   :  { %v2166_v0 = vadd.f32 %v3799_v22, %v1858_v40 }
 0x29e   :  { %v2046_v39 = vpop.f32.mrf.mxu1 }
 0x29f   :  { %v2165_v19 = vadd.f32 %v2046_v39, %v1853_v43 }
 0x2a0   :  { %v3802_v58 = vpop.f32.mrf.mxu1 }
 0x2a1   :  { %v2168_v3 = vadd.f32 %v3802_v58, %v1868_v61  ;;  %v2196_v51 = vadd.f32 %v5264_v55, %v2165_v19  ;;  %v2197_v58 = vadd.f32 %v5264_v55, %v2166_v0  ;;  %v1903_v19 = vadd.f32 %v1902_v36, %v5206_v60 }
 0x2a2   :  { %v2056_v13 = vpop.f32.mrf.mxu1 }
 0x2a3   :  { %v2167_v52 = vadd.f32 %v2056_v13, %v1863_v42  ;;  %v2199_v46 = vadd.f32 %v5264_v55, %v2168_v3  ;;  %v1918_v3 = vadd.f32 %v5235_v6, %v5208_v17  ;;  %v1923_v17 = vadd.f32 %v5241_v26, %v5214_v45  ;;  %v3155_v45 = vld [vmem:[%s5393_s5 + $0x30] sm:$0xff] }
 0x2a4   :  { %v3805_v8 = vpop.f32.mrf.mxu1 }
 0x2a5   :  { %v2170_v49 = vadd.f32 %v3805_v8, %v1878_v2  ;;  %v2198_v4 = vadd.f32 %v5264_v55, %v2167_v52  ;;  %v2220_v8 = vmax.f32 %v2196_v51, 0.0  ;;  %v2223_v50 = vmax.f32 %v2199_v46, 0.0 }
 0x2a6   :  { %v2066_v37 = vpop.f32.mrf.mxu1  ;;  %v2221_v52 = vmax.f32 %v2197_v58, 0.0 }
 0x2a7   :  { %v2169_v47 = vadd.f32 %v2066_v37, %v1873_v24  ;;  %v2201_v11 = vadd.f32 %v5264_v55, %v2170_v49  ;;  %v3152_v49 = vld [vmem:[%s5393_s5 + $0x28] sm:$0xff] }
 0x2a8   :  { %v3808_v48 = vpop.f32.mrf.mxu1 }
 0x2a9   :  { %v2172_v29 = vadd.f32 %v3808_v48, %v1888_v54  ;;  %v2200_v16 = vadd.f32 %v5264_v55, %v2169_v47  ;;  %v2225_v13 = vmax.f32 %v2201_v11, 0.0  ;;  %v2256_v54 = vld [vmem:[%s5393_s5] sm:$0xff]  ;;  %v1913_v47 = vadd.f32 %v5237_v1, %v5210_v62 }
 0x2aa   :  { %v2076_v15 = vpop.f32.mrf.mxu1  ;;  %v1928_v62 = vadd.f32 %v5239_v34, %v5212_v23  ;;  %v3156_v23 = vld [vmem:[%s5393_s5 + $0x38] sm:$0xff]  ;;  %v1938_v34 = vadd.f32 %v5243_v53, %v5219_v18  ;;  %v1933_v18 = vadd.f32 %v5245_v27, %v5221_v38  ;;  %v1943_v27 = vadd.f32 %v5249_v21, %v5225_v41  ;;  %v3159_v41 = vld [vmem:[%s5393_s5 + $0x40] sm:$0xff] }
 0x2ab   :  { %v2203_v28 = vadd.f32 %v5264_v55, %v2172_v29  ;;  %v2171_v63 = vadd.f32 %v2076_v15, %v1883_v30  ;;  %v2222_v29 = vmax.f32 %v2198_v4, 0.0  ;;  %v2224_v30 = vmax.f32 %v2200_v16, 0.0  ;;  %v5471_v21 = vld [vmem:[#allocation34_spill] sm:$0xff] }
 0x2ac   :  { %v3811_v48 = vpop.f32.mrf.mxu1  ;;  %v2245_v15 = vmax.f32 %v2221_v52, %v2223_v50  ;;  %v5472_v52 = vld [vmem:[#allocation31_spill] sm:$0xff] }
 0x2ad   :  { %v2202_v33 = vadd.f32 %v5264_v55, %v2171_v63  ;;  %v2227_v31 = vmax.f32 %v2203_v28, 0.0  ;;  %v2174_v44 = vadd.f32 %v3811_v48, %v1898_v57  ;;  %v2244_v24 = vmax.f32 %v2220_v8, %v2222_v29  ;;  %v3160_v29 = vld [vmem:[%s5393_s5 + $0x48] sm:$0xff] }
 0x2ae   :  { %v2086_v39 = vpop.f32.mrf.mxu1 }
 0x2af   :  { %v2226_v40 = vmax.f32 %v2202_v33, 0.0  ;;  %v2173_v22 = vadd.f32 %v2086_v39, %v1893_v14  ;;  %v2247_v9 = vmax.f32 %v2225_v13, %v2227_v31  ;;  %v2205_v60 = vadd.f32 %v5264_v55, %v2174_v44 }
 0x2b0   :  { %v3814_v7 = vpop.f32.mrf.mxu1 }
 0x2b1   :  { %v2246_v42 = vmax.f32 %v2224_v30, %v2226_v40  ;;  %v2176_v12 = vadd.f32 %v3814_v7, %v1908_v32  ;;  %v2204_v2 = vadd.f32 %v5264_v55, %v2173_v22  ;;  %v2229_v0 = vmax.f32 %v2205_v60, 0.0  ;;  %v5473_v60 = vld [vmem:[#allocation6_spill] sm:$0xff] }
 0x2b2   :  { %v2096_v35 = vpop.f32.mrf.mxu1  ;;  %v1948_v22 = vadd.f32 %v5247_v25, %v5223_v5 }
 0x2b3   :  { %v2207_v37 = vadd.f32 %v5264_v55, %v2176_v12  ;;  %v2175_v43 = vadd.f32 %v2096_v35, %v1903_v19  ;;  %3837 = vmatprep.mubr.msk.f32.mxu0 %vm1522_vm1, %v2246_v42  ;;  %v2228_v1 = vmax.f32 %v2204_v2, 0.0 }
 0x2b4   :  { %v3817_v36 = vpop.f32.mrf.mxu1  ;;  %3838 = vmatmul.mubr.msk.f32.vlgmr.msra.gmra.mxu0 %vm1522_vm1, %v2247_v9  ;;  %v1958_v9 = vadd.f32 %v5251_v56, %v5227_v59 }
 0x2b5   :  { %v2206_v61 = vadd.f32 %v5264_v55, %v2175_v43  ;;  %3841 = vmatpush3.msra.mxu0 %v5197_v10  ;;  %3844 = vmatprep.mubr.msk.f32.mxu0 %vm1522_vm1, %v2244_v24  ;;  %v2231_v4 = vmax.f32 %v2207_v37, 0.0  ;;  %v3151_v10 = vld [vmem:[%s5393_s5 + $0x20] sm:$0xff]  ;;  %v2178_v11 = vadd.f32 %v3817_v36, %v1918_v3  ;;  %v1953_v24 = vadd.f32 %v5471_v21, %v5229_v20 }
 0x2b6   :  { %v2106_v16 = vpop.f32.mrf.mxu1  ;;  %3842 = vmatprep.subr.mxu0 %v2256_v54  ;;  %v1968_v36 = vadd.f32 %v5473_v60, %v5472_v52 }
 0x2b7   :  { %v2230_v28 = vmax.f32 %v2206_v61, 0.0  ;;  %v2177_v63 = vadd.f32 %v2106_v16, %v1913_v47  ;;  %3843 = vmatpush3.msra.mxu0 %v2256_v54  ;;  %v2249_v51 = vmax.f32 %v2229_v0, %v2231_v4  ;;  %v2209_v26 = vadd.f32 %v5264_v55, %v2178_v11  ;;  %v3164_v54 = vld [vmem:[%s5393_s5 + $0x58] sm:$0xff]  ;;  %v5474_v4 = vld [vmem:[#allocation5_spill] sm:$0xff]  ;;  %v5475_v16 = vld [vmem:[#allocation36_spill] sm:$0xff] }
 0x2b8   :  { %v3820_v48 = vpop.f32.mrf.mxu1  ;;  %3845 = vmatmul.mubr.msk.f32.vlgmr.msra.gmra.mxu0 %vm1522_vm1, %v2245_v15  ;;  %3847 = vmatprep.subr.mxu0 %v3152_v49 }
 0x2b9   :  { %v2248_v6 = vmax.f32 %v2228_v1, %v2230_v28  ;;  %v2180_v14 = vadd.f32 %v3820_v48, %v1928_v62  ;;  %3848 = vmatpush3.msra.mxu0 %v3152_v49  ;;  %v2208_v57 = vadd.f32 %v5264_v55, %v2177_v63  ;;  %v2233_v7 = vmax.f32 %v2209_v26, 0.0  ;;  %v2780_v26 = vld [vmem:[%s5395_s7 + $0x10] sm:$0xff] }
 0x2ba   :  { %v2116_v33 = vpop.f32.mrf.mxu1  ;;  %3849 = vmatprep.subr.mxu0 %v3151_v10  ;;  %v1963_v62 = vadd.f32 %v5475_v16, %v5474_v4 }
 0x2bb   :  { %v2211_v32 = vadd.f32 %v5264_v55, %v2180_v14  ;;  %v2179_v46 = vadd.f32 %v2116_v33, %v1923_v17  ;;  %3850 = vmatpush3.msra.mxu0 %v3151_v10  ;;  %3851 = vmatprep.mubr.msk.f32.mxu0 %vm1522_vm1, %v2248_v6  ;;  %v2232_v58 = vmax.f32 %v2208_v57, 0.0  ;;  %v3163_v17 = vld [vmem:[%s5393_s5 + $0x50] sm:$0xff] }
 0x2bc   :  { %v3823_v31 = vpop.f32.mrf.mxu1  ;;  %3852 = vmatmul.mubr.msk.f32.vlgmr.msra.gmra.mxu0 %vm1522_vm1, %v2249_v51  ;;  %3854 = vmatprep.subr.mxu0 %v3156_v23 }
 0x2bd   :  { %v2210_v53 = vadd.f32 %v5264_v55, %v2179_v46  ;;  %v2182_v39 = vadd.f32 %v3823_v31, %v1938_v34  ;;  %3855 = vmatpush3.msra.mxu0 %v3156_v23  ;;  %v2235_v30 = vmax.f32 %v2211_v32, 0.0  ;;  %v2784_v32 = vld [vmem:[%s5395_s7 + $0x30] sm:$0xff]  ;;  %v2782_v46 = vld [vmem:[%s5395_s7 + $0x20] sm:$0xff]  ;;  %v2779_v31 = vld [vmem:[%s5395_s7 + $0x8] sm:$0xff] }
 0x2be   :  { %v2126_v40 = vpop.f32.mrf.mxu1  ;;  %3856 = vmatprep.subr.mxu0 %v3155_v45  ;;  %3877 = vmatprep.subr.mxu1 %v2784_v32 }
 0x2bf   :  { %v2234_v13 = vmax.f32 %v2210_v53, 0.0  ;;  %v2181_v44 = vadd.f32 %v2126_v40, %v1933_v18  ;;  %3857 = vmatpush3.msra.mxu0 %v3155_v45  ;;  %v2213_v8 = vadd.f32 %v5264_v55, %v2182_v39  ;;  %v2251_v12 = vmax.f32 %v2233_v7, %v2235_v30  ;;  %3878 = vmatpush3.msra.mxu1 %v2784_v32  ;;  %v2781_v45 = vld [vmem:[%s5395_s7 + $0x18] sm:$0xff]  ;;  %v2778_v18 = vld [vmem:[%s5395_s7] sm:$0xff] }
 0x2c0   :  { %v3826_v38 = vpop.f32.mrf.mxu1  ;;  %3861 = vmatprep.subr.mxu0 %v3160_v29 }
 0x2c1   :  { %v2250_v19 = vmax.f32 %v2232_v58, %v2234_v13  ;;  %v2184_v42 = vadd.f32 %v3826_v38, %v1948_v22  ;;  %v2212_v5 = vadd.f32 %v5264_v55, %v2181_v44  ;;  %v2237_v37 = vmax.f32 %v2213_v8, 0.0 }
 0x2c2   :  { %v2136_v50 = vpop.f32.mrf.mxu1 }
 0x2c3   :  { %v2215_v25 = vadd.f32 %v5264_v55, %v2184_v42  ;;  %v2183_v35 = vadd.f32 %v2136_v50, %v1943_v27  ;;  %3858 = vmatprep.mubr.msk.f32.mxu0 %vm1522_vm1, %v2250_v19  ;;  %v2236_v61 = vmax.f32 %v2212_v5, 0.0 }
 0x2c4   :  { %v3829_v2 = vpop.f32.mrf.mxu1  ;;  %3859 = vmatmul.mubr.msk.f32.vlgmr.msra.gmra.mxu0 %vm1522_vm1, %v2251_v12 }
 0x2c5   :  { %v2239_v43 = vmax.f32 %v2215_v25, 0.0  ;;  %v2214_v59 = vadd.f32 %v5264_v55, %v2183_v35  ;;  %v2186_v56 = vadd.f32 %v3829_v2, %v1958_v9  ;;  %3862 = vmatpush3.msra.mxu0 %v3160_v29  ;;  %v3167_v35 = vld [vmem:[%s5394_s6] ss:$0 sm:$0xff]  ;;  %s3899_s6 = scalar_lea.vmem %s2887_s10, 256 }
 0x2c6   :  { %v2146_v47 = vpop.f32.mrf.mxu1  ;;  %3863 = vmatprep.subr.mxu0 %v3159_v41  ;;  %p3900_p0 = scmp.ne.s32.totalorder %s2887_s10, %s3899_s6  ;;  %p3905_p2 = scmp.lt.s32.totalorder %s3899_s6, %s3899_s6 }
 0x2c7   :  { %v2253_v20 = vmax.f32 %v2237_v37, %v2239_v43  ;;  %v2238_v49 = vmax.f32 %v2214_v59, 0.0  ;;  %v2185_v3 = vadd.f32 %v2146_v47, %v1953_v24  ;;  %3864 = vmatpush3.msra.mxu0 %v3159_v41  ;;  %v2217_v28 = vadd.f32 %v5264_v55, %v2186_v56  ;;  %v3168_v59 = vld [vmem:[%s5396_s8] ss:$0 sm:$0xff] }
 0x2c8   :  { %v3832_v15 = vpop.f32.mrf.mxu1  ;;  %3868 = vmatprep.subr.mxu0 %v3164_v54  ;;  %p3906_p3 = por %p3905_p2, %p3904_p1 }
 0x2c9   :  { %v2252_v1 = vmax.f32 %v2236_v61, %v2238_v49  ;;  %v2188_v63 = vadd.f32 %v3832_v15, %v1968_v36  ;;  %v2216_v0 = vadd.f32 %v5264_v55, %v2185_v3  ;;  %v2241_v6 = vmax.f32 %v2217_v28, 0.0 }
 0x2ca   :  { %v2156_v10 = vpop.f32.mrf.mxu1  ;;  %p3907_p4 = pnand %p3906_p3, %p3900_p0 }
 0x2cb   :  { %v2219_v11 = vadd.f32 %v5264_v55, %v2188_v63  ;;  %v2187_v48 = vadd.f32 %v2156_v10, %v1963_v62  ;;  %3865 = vmatprep.mubr.msk.f32.mxu0 %vm1522_vm1, %v2252_v1  ;;  %v2240_v34 = vmax.f32 %v2216_v0, 0.0 }
 0x2cc   :  { %3866 = vmatmul.mubr.msk.f32.vlgmr.msra.gmra.mxu0 %vm1522_vm1, %v2253_v20 }
 0x2cd   :  { %v2243_v14 = vmax.f32 %v2219_v11, 0.0  ;;  %v2218_v23 = vadd.f32 %v5264_v55, %v2187_v48  ;;  %3869 = vmatpush3.msra.mxu0 %v3164_v54  ;;  %v2783_v55 = vld [vmem:[%s5395_s7 + $0x28] sm:$0xff] }
 0x2ce   :  { %3870 = vmatprep.subr.mxu0 %v3163_v17  ;;  %3879 = vmatprep.subr.mxu1 %v2783_v55 }
 0x2cf   :  { %v2255_v51 = vmax.f32 %v2241_v6, %v2243_v14  ;;  %v2242_v33 = vmax.f32 %v2218_v23, 0.0  ;;  %3871 = vmatpush3.msra.mxu0 %v3163_v17  ;;  %3880 = vmatpush3.msra.mxu1 %v2783_v55 }
 0x2d0   :  { %3881 = vmatprep.subr.mxu1 %v2782_v46 }
 0x2d1   :  { %v2254_v57 = vmax.f32 %v2240_v34, %v2242_v33  ;;  %3882 = vmatpush3.msra.mxu1 %v2782_v46 }
 0x2d2   :  { %3883 = vmatprep.subr.mxu1 %v2781_v45 }
 0x2d3   :  { %3872 = vmatprep.mubr.msk.f32.mxu0 %vm1522_vm1, %v2254_v57  ;;  %3884 = vmatpush3.msra.mxu1 %v2781_v45 }
 0x2d4   :  { %3873 = vmatmul.mubr.msk.f32.vlgmr.msra.gmra.mxu0 %vm1522_vm1, %v2255_v51  ;;  %3885 = vmatprep.subr.mxu1 %v2780_v26 }
 0x2d5   :  { %3886 = vmatpush3.msra.mxu1 %v2780_v26 }
 0x2d6   :  { %3887 = vmatprep.subr.mxu1 %v2779_v31 }
 0x2d7   :  { %3888 = vmatpush3.msra.mxu1 %v2779_v31 }
 0x2d8   :  { %3889 = vmatprep.subr.mxu1 %v2778_v18 }
 0x2d9   :  { %3890 = vmatpush3.msra.mxu1 %v2778_v18 }
 0x374   :  { %v3839_v53 = vpop.f32.mrf.mxu0 }
 0x376   :  { %v2333_v39 = vpop.f32.mrf.mxu0 }
 0x378   :  { %v3846_v29 = vpop.f32.mrf.mxu0 }
 0x379   :  { %v2420_v44 = vadd.f32 %v3846_v29, %v3839_v53 }
 0x37a   :  { %v2414_v30 = vpop.f32.mrf.mxu0 }
 0x37b   :  { %v2415_v38 = vadd.f32 %v2414_v30, %v2333_v39 }
 0x37c   :  { %v3853_v40 = vpop.f32.mrf.mxu0 }
 0x37d   :  { %v2508_v27 = vadd.f32 %v3853_v40, %v2420_v44 }
 0x37e   :  { %v2498_v22 = vpop.f32.mrf.mxu0 }
 0x37f   :  { %v2507_v19 = vadd.f32 %v2498_v22, %v2415_v38 }
 0x384   :  { %v3860_v58 = vpop.f32.mrf.mxu0 }
 0x385   :  { %v2594_v8 = vadd.f32 %v3860_v58, %v2508_v27 }
 0x386   :  { %v2584_v13 = vpop.f32.mrf.mxu0 }
 0x387   :  { %v2593_v12 = vadd.f32 %v2584_v13, %v2507_v19 }
 0x38c   :  { %v3867_v7 = vpop.f32.mrf.mxu0 }
 0x38d   :  { %v2680_v50 = vadd.f32 %v3867_v7, %v2594_v8 }
 0x38e   :  { %v2670_v42 = vpop.f32.mrf.mxu0 }
 0x38f   :  { %v2679_v5 = vadd.f32 %v2670_v42, %v2593_v12 }
 0x394   :  { %v3874_v9 = vpop.f32.mrf.mxu0 }
 0x395   :  { %v2766_v25 = vadd.f32 %v3874_v9, %v2680_v50 }
 0x396   :  { %v2756_v41 = vpop.f32.mrf.mxu0 }
 0x397   :  { %v2765_v21 = vadd.f32 %v2756_v41, %v2679_v5  ;;  %v2775_v24 = vadd.f32 %v3167_v35, %v2766_v25 }
 0x399   :  { %v2774_v2 = vadd.f32 %v3167_v35, %v2765_v21  ;;  %v2777_v43 = vmax.f32 %v2775_v24, 0.0 }
 0x39b   :  { %v2776_v37 = vmax.f32 %v2774_v2, 0.0 }
 0x39d   :  { %3891 = vmatprep.mubr.msk.f32.mxu1 %vm2793_vm3, %v2776_v37 }
 0x39e   :  { %3892 = vmatmul.mubr.msk.f32.vlgmr.msra.gmra.mxu1 %vm2793_vm3, %v2777_v43 }
 0x45e   :  { %v3893_v56 = vpop.f32.mrf.mxu1 }
 0x45f   :  { %v2876_v54 = vadd.f32 %v3893_v56, %v3168_v59 }
 0x460   :  { %v2870_v52 = vpop.f32.mrf.mxu1 }
 0x461   :  { %2880 = vst [vmem:[#allocation2 + $0x8] sm:$0xff] %v2876_v54  ;;  %v2871_v60 = vadd.f32 %v3168_v59, %v2870_v52 }
 0x463   :  { %2879 = vst [vmem:[#allocation2] sm:$0xff] %v2871_v60 }
 0x464   :  { %3910 = shalt.err (!%p3907_p4)
}
 0x465   :  { %s3922_s2 = smov 128   ;;  %s3923_s11 = smov 8  }
 0x466   :  { %2892 = dma.vmem_to_hbm [thread:$0]  %s2887_s10, 256, %s5397_s9, [#allocation3], %s3922_s2, %s3922_s2, %s3923_s11  }
 0x467   :  { %3919 = dma.done.wait [#allocation3], 256  }
 0x468   :  { %3920 = vsyncadd [#allocation3], 4294967040 }
 0x469   :  { %2896 = vsyncpa [#allocation3], 1 }

</bundles_post_ra>
